<compile_context>
chip_gen: v5e
topology: v5e:2x2
jax: 0.10.0
libtpu: 0.0.40
codegen_flags: <defaults>
</compile_context>

<pallas_src>
import functools
import math

import jax
import jax.numpy as jnp
from jax.experimental import pallas as pl
from jax.experimental.pallas import tpu as pltpu

LN_EPS = 1e-5  # PyTorch nn.LayerNorm default

# Rows of the packed (NUM_VEC, W) parameter slab.
LN1_G, LN1_B, LN2_G, LN2_B, LN3_G, LN3_B, LNP_G, LNP_B = range(8)
B_QP, B_CQ, B_K, B_V, B_CP, B_MP = range(8, 14)
NUM_VEC = 14


def _round_up(n, m):
    return ((n + m - 1) // m) * m


# ----------------------------- glue (plain JAX) -----------------------------

def fourier_embed(x, num_freqs):
    """FourierEmbedder with logspace=True, include_input=True, include_pi=True."""
    freqs = (2.0 ** jnp.arange(num_freqs, dtype=x.dtype)) * jnp.pi          # (F,)
    ang = (x[..., None] * freqs).reshape(*x.shape[:-1], x.shape[-1] * num_freqs)
    return jnp.concatenate([x, jnp.sin(ang), jnp.cos(ang)], axis=-1)


# ------------------------------- kernel helpers ------------------------------

def _layernorm(x, g, b):
    mu = jnp.mean(x, axis=-1, keepdims=True)
    var = jnp.mean((x - mu) ** 2, axis=-1, keepdims=True)
    return (x - mu) * jax.lax.rsqrt(var + LN_EPS) * g + b


def _gelu_exact(x):
    # matches torch.nn.GELU() (exact erf form)
    return 0.5 * x * (1.0 + jax.lax.erf(x * (1.0 / math.sqrt(2.0))))


# --------------------------------- kernel ------------------------------------

def decoder_kernel(heads, dh,
                   q_ref, lat_ref, vec_ref,
                   w_qp_ref, w_cq_ref, w_k_ref, w_v_ref, w_cp_ref,
                   w_fc_ref, b_fc_ref, w_mp_ref,
                   w_out_ref, b_out_ref,
                   out_ref,
                   k_scr, v_scr, attn_scr):
    bf16, f32 = jnp.bfloat16, jnp.float32

    # ---- latent-side work: compute K/V once per batch (first Nq tile only) ----
    @pl.when(pl.program_id(1) == 0)
    def _():
        lat = lat_ref[0].astype(f32)                                       # (Nlat, W)
        ln_lat = _layernorm(lat, vec_ref[LN2_G], vec_ref[LN2_B]).astype(bf16)
        k = jnp.dot(ln_lat, w_k_ref[...], preferred_element_type=f32) + vec_ref[B_K]
        v = jnp.dot(ln_lat, w_v_ref[...], preferred_element_type=f32) + vec_ref[B_V]
        k_scr[...] = k.astype(bf16)                                        # scale folded
        v_scr[...] = v.astype(bf16)

    # ---- query_proj ----
    q_emb = q_ref[0]                                                       # (TQ, De) bf16
    x = jnp.dot(q_emb, w_qp_ref[...], preferred_element_type=f32) + vec_ref[B_QP]

    # ---- ResidualCrossAttentionBlock: x = x + c_proj(attn(c_q(ln1 x), c_kv(ln2 data))) ----
    xn = _layernorm(x, vec_ref[LN1_G], vec_ref[LN1_B]).astype(bf16)
    q = (jnp.dot(xn, w_cq_ref[...], preferred_element_type=f32)
         + vec_ref[B_CQ]).astype(bf16)                                     # (TQ, W), scale folded

    for h in range(heads):                                                 # static unroll
        sl = slice(h * dh, (h + 1) * dh)
        q_h = q[:, sl]                                                     # (TQ, dh)   bf16
        k_h = k_scr[:, sl]                                                 # (Nlat, dh) bf16
        v_h = v_scr[:, sl]                                                 # (Nlat, dh) bf16
        s = jax.lax.dot_general(q_h, k_h, (((1,), (1,)), ((), ())),
                                preferred_element_type=f32)                # (TQ, Nlat)
        s = s - jnp.max(s, axis=-1, keepdims=True)
        p = jnp.exp(s)
        p = p * pl.reciprocal(jnp.sum(p, axis=-1, keepdims=True), approx=True)
        o_h = jnp.dot(p.astype(bf16), v_h, preferred_element_type=f32)
        attn_scr[:, sl] = o_h.astype(bf16)                                 # no concatenate

    attn = jnp.dot(attn_scr[...], w_cp_ref[...], preferred_element_type=f32) + vec_ref[B_CP]
    x = x + attn

    # ---- MLP residual: x = x + c_proj(gelu(c_fc(ln3 x))) ----
    xm = _layernorm(x, vec_ref[LN3_G], vec_ref[LN3_B]).astype(bf16)
    h1 = jnp.dot(xm, w_fc_ref[...], preferred_element_type=f32) + b_fc_ref[0]
    h1 = _gelu_exact(h1).astype(bf16)
    x = x + jnp.dot(h1, w_mp_ref[...], preferred_element_type=f32) + vec_ref[B_MP]

    # ---- ln_post + output_proj (lane-dense padded output) ----
    xp = _layernorm(x, vec_ref[LNP_G], vec_ref[LNP_B]).astype(bf16)
    y = jnp.dot(xp, w_out_ref[...], preferred_element_type=f32) + b_out_ref[0]
    out_ref[0] = y.astype(out_ref.dtype)


# --------------------------------- wrapper ------------------------------------

def perceiver_decoder(queries, latents, params, *, heads, num_freqs, tq=512):
    B, Nq, _ = queries.shape
    Nlat, W = latents.shape[1], latents.shape[2]
    assert W % heads == 0
    dh = W // heads
    out_dim = params["w_out"].shape[1]
    bf16, f32 = jnp.bfloat16, jnp.float32

    # ---- host-side parameter prep ----
    scale = dh ** -0.25
    # de-interleave c_kv (per-head [k_h | v_h] blocks) into contiguous K / V projections
    w_ckv = params["w_ckv"].reshape(W, heads, 2 * dh)
    b_ckv = params["b_ckv"].reshape(heads, 2 * dh)
    w_k = w_ckv[:, :, :dh].reshape(W, W)
    w_v = w_ckv[:, :, dh:].reshape(W, W)
    b_k = b_ckv[:, :dh].reshape(1, W)
    b_v = b_ckv[:, dh:].reshape(1, W)

    # one packed (NUM_VEC, W) slab for all LN params + W-sized biases (f32)
    vecs = jnp.concatenate([
        params["ln1_g"], params["ln1_b"], params["ln2_g"], params["ln2_b"],
        params["ln3_g"], params["ln3_b"], params["lnp_g"], params["lnp_b"],
        params["b_qp"], params["b_cq"] * scale, b_k * scale, b_v,
        params["b_cp"], params["b_mp"],
    ], axis=0).astype(f32)                                                  # (14, W)

    # lane-dense output: pad out_dim to a multiple of 128, slice after the call
    out_pad = _round_up(out_dim, 128)
    w_out_p = jnp.zeros((W, out_pad), f32).at[:, :out_dim].set(params["w_out"])
    b_out_p = jnp.zeros((1, out_pad), f32).at[:, :out_dim].set(params["b_out"])

    w_qp = params["w_qp"].astype(bf16)
    w_cq = (params["w_cq"] * scale).astype(bf16)
    w_k = (w_k * scale).astype(bf16)
    w_v = w_v.astype(bf16)
    w_cp = params["w_cp"].astype(bf16)
    w_fc = params["w_fc"].astype(bf16)
    b_fc = params["b_fc"].astype(f32)
    w_mp = params["w_mp"].astype(bf16)
    w_out = w_out_p.astype(bf16)
    b_out = b_out_p.astype(f32)

    # ---- activations ----
    # TODO(synk): Fourier embedding kept in the JAX wrapper (cheap glue, fused by XLA);
    # fusing it in-kernel would further cut query-stream DMA at very large Nq, but the
    # raw (TQ, 3) layout is lane-hostile in-kernel.
    q_emb = fourier_embed(queries.astype(f32), num_freqs).astype(bf16)
    De = q_emb.shape[-1]
    lat_b = latents.astype(bf16)

    # tile / pad the query axis
    tq_eff = min(_round_up(tq, 8), _round_up(Nq, 8))
    nq_pad = _round_up(Nq, tq_eff)
    if nq_pad != Nq:
        q_emb = jnp.pad(q_emb, ((0, 0), (0, nq_pad - Nq), (0, 0)))
    n_tiles = nq_pad // tq_eff

    def full_spec(a):
        return pl.BlockSpec(a.shape, lambda b, t: (0,) * a.ndim)

    param_list = [vecs, w_qp, w_cq, w_k, w_v, w_cp, w_fc, b_fc, w_mp, w_out, b_out]

    in_specs = ([pl.BlockSpec((1, tq_eff, De), lambda b, t: (b, t, 0)),
                 pl.BlockSpec((1, Nlat, W), lambda b, t: (b, 0, 0))]
                + [full_spec(a) for a in param_list])
    out_spec = pl.BlockSpec((1, tq_eff, out_pad), lambda b, t: (b, t, 0))

    # advisory cost estimate (f32-equivalent flops; helps XLA scheduling)
    mm_flops = (2 * B * nq_pad * (De * W + 3 * W * W + 2 * Nlat * W + 4 * W * W * 2
                                  + W * out_pad)
                + 2 * B * Nlat * 2 * W * W)
    bytes_acc = (q_emb.size * 2 + lat_b.size * 2 + B * nq_pad * out_pad * 4
                 + sum(int(a.size) * (2 if a.dtype == bf16 else 4) for a in param_list))
    cost = pl.CostEstimate(flops=int(mm_flops),
                           transcendentals=int(B * nq_pad * (heads * Nlat + 4 * W)),
                           bytes_accessed=int(bytes_acc))

    kernel = functools.partial(decoder_kernel, heads, dh)
    out = pl.pallas_call(
        kernel,
        out_shape=jax.ShapeDtypeStruct((B, nq_pad, out_pad), queries.dtype),
        grid_spec=pltpu.PrefetchScalarGridSpec(
            num_scalar_prefetch=0,
            grid=(B, n_tiles),
            in_specs=in_specs,
            out_specs=out_spec,
            scratch_shapes=[pltpu.VMEM((Nlat, W), bf16),      # K (scale folded)
                            pltpu.VMEM((Nlat, W), bf16),      # V
                            pltpu.VMEM((tq_eff, W), bf16)]),  # per-head attn outputs
        compiler_params=pltpu.CompilerParams(
            dimension_semantics=("parallel", "arbitrary"),
            vmem_limit_bytes=48 * 1024 * 1024),
        cost_estimate=cost,
    )(q_emb, lat_b, *param_list)

    return out[:, :Nq, :out_dim]


# ------------------------- pure-JAX reference (check) -------------------------

def reference_forward(queries, latents, params, *, heads, num_freqs):
    q_emb = fourier_embed(queries, num_freqs)
    x = q_emb @ params["w_qp"] + params["b_qp"]
    xn = _layernorm(x, params["ln1_g"], params["ln1_b"])
    ln_lat = _layernorm(latents, params["ln2_g"], params["ln2_b"])
    q = xn @ params["w_cq"] + params["b_cq"]
    kv = ln_lat @ params["w_ckv"] + params["b_ckv"]
    B, Nq, W = q.shape
    Nlat = kv.shape[1]
    dh = W // heads
    scale = dh ** -0.25
    qh = q.reshape(B, Nq, heads, dh) * scale
    kvh = kv.reshape(B, Nlat, heads, 2 * dh)
    kh, vh = kvh[..., :dh] * scale, kvh[..., dh:]
    w = jax.nn.softmax(jnp.einsum("bthc,bshc->bhts", qh, kh), axis=-1)
    attn = jnp.einsum("bhts,bshc->bthc", w, vh).reshape(B, Nq, W)
    x = x + attn @ params["w_cp"] + params["b_cp"]
    xm = _layernorm(x, params["ln3_g"], params["ln3_b"])
    h1 = _gelu_exact(xm @ params["w_fc"] + params["b_fc"])
    x = x + h1 @ params["w_mp"] + params["b_mp"]
    xp = _layernorm(x, params["lnp_g"], params["lnp_b"])
    return xp @ params["w_out"] + params["b_out"]


# ----------------------------------- main -------------------------------------

def init_params(key, embed_dim, width, out_dim):
    ks = jax.random.split(key, 12)
    s = 0.05
    return {
        "w_qp":  jax.random.normal(ks[0], (embed_dim, width), jnp.float32) * s,
        "b_qp":  jax.random.normal(ks[1], (1, width), jnp.float32) * s,
        "ln1_g": jnp.ones((1, width), jnp.float32),
        "ln1_b": jnp.zeros((1, width), jnp.float32),
        "ln2_g": jnp.ones((1, width), jnp.float32),
        "ln2_b": jnp.zeros((1, width), jnp.float32),
        "w_cq":  jax.random.normal(ks[2], (width, width), jnp.float32) * s,
        "b_cq":  jax.random.normal(ks[3], (1, width), jnp.float32) * s,
        "w_ckv": jax.random.normal(ks[4], (width, 2 * width), jnp.float32) * s,
        "b_ckv": jax.random.normal(ks[5], (1, 2 * width), jnp.float32) * s,
        "w_cp":  jax.random.normal(ks[6], (width, width), jnp.float32) * s,
        "b_cp":  jax.random.normal(ks[7], (1, width), jnp.float32) * s,
        "ln3_g": jnp.ones((1, width), jnp.float32),
        "ln3_b": jnp.zeros((1, width), jnp.float32),
        "w_fc":  jax.random.normal(ks[8], (width, 4 * width), jnp.float32) * s,
        "b_fc":  jax.random.normal(ks[9], (1, 4 * width), jnp.float32) * s,
        "w_mp":  jax.random.normal(ks[10], (4 * width, width), jnp.float32) * s,
        "b_mp":  jnp.zeros((1, width), jnp.float32),
        "lnp_g": jnp.ones((1, width), jnp.float32),
        "lnp_b": jnp.zeros((1, width), jnp.float32),
        "w_out": jax.random.normal(ks[11], (width, out_dim), jnp.float32) * s,
        "b_out": jnp.zeros((1, out_dim), jnp.float32),
    }


if __name__ == "__main__":
    # TODO(synk): `checkpoint(...)` (gradient checkpointing) and `use_flash` are
    # training/impl flags with no forward-semantics effect; not reproduced.
    B, Nq, Nlat = 2, 16, 8
    num_freqs = 4
    in_dim = 3
    embed_dim = in_dim * (2 * num_freqs + 1)   # FourierEmbedder.out_dim = 27
    width, heads, out_dim = 32, 4, 4

    key = jax.random.PRNGKey(0)
    kq, kl, kp = jax.random.split(key, 3)
    queries = jax.random.normal(kq, (B, Nq, in_dim), jnp.float32)
    latents = jax.random.normal(kl, (B, Nlat, width), jnp.float32)
    params = init_params(kp, embed_dim, width, out_dim)

    out = perceiver_decoder(queries, latents, params, heads=heads, num_freqs=num_freqs)
    out = jax.block_until_ready(out)

    ref = reference_forward(queries, latents, params, heads=heads, num_freqs=num_freqs)
    ref = jax.block_until_ready(ref)

    assert out.shape == (B, Nq, out_dim)
    max_err = float(jnp.max(jnp.abs(out - ref)))
    # kernel runs matmuls in bf16 (f32 accumulation) -> compare with a bf16-level tolerance
    assert jnp.allclose(out, ref, atol=3e-2, rtol=3e-2), max_err
    print("KERNEL_OK")
</pallas_src>

<mosaic_0001>
module attributes {stable_mosaic.version = 11 : i64} {
  func.func @decoder_kernel(%arg0: i32, %arg1: i32, %arg2: memref<1x16x27xbf16, #tpu.memory_space<vmem>>, %arg3: memref<1x8x32xbf16, #tpu.memory_space<vmem>>, %arg4: memref<14x32xf32, #tpu.memory_space<vmem>>, %arg5: memref<27x32xbf16, #tpu.memory_space<vmem>>, %arg6: memref<32x32xbf16, #tpu.memory_space<vmem>>, %arg7: memref<32x32xbf16, #tpu.memory_space<vmem>>, %arg8: memref<32x32xbf16, #tpu.memory_space<vmem>>, %arg9: memref<32x32xbf16, #tpu.memory_space<vmem>>, %arg10: memref<32x128xbf16, #tpu.memory_space<vmem>>, %arg11: memref<1x128xf32, #tpu.memory_space<vmem>>, %arg12: memref<128x32xbf16, #tpu.memory_space<vmem>>, %arg13: memref<32x128xbf16, #tpu.memory_space<vmem>>, %arg14: memref<1x128xf32, #tpu.memory_space<vmem>>, %arg15: memref<1x16x128xf32, #tpu.memory_space<vmem>>, %arg16: memref<8x32xbf16, #tpu.memory_space<vmem>>, %arg17: memref<8x32xbf16, #tpu.memory_space<vmem>>, %arg18: memref<16x32xbf16, #tpu.memory_space<vmem>>) attributes {dimension_semantics = [#tpu.dimension_semantics<parallel>, #tpu.dimension_semantics<arbitrary>], iteration_bounds = array<i64: 2, 1>, scalar_prefetch = 0 : i64, scratch_operands = 3 : i64, tpu.core_type = #tpu.core_type<tc>, window_params = [{transform_indices = @transform_0, window_bounds = array<i64: 1, 16, 27>}, {transform_indices = @transform_1, window_bounds = array<i64: 1, 8, 32>}, {pipeline_mode = #tpu.pipeline_mode<synchronous>, transform_indices = @transform_2, window_bounds = array<i64: 14, 32>}, {pipeline_mode = #tpu.pipeline_mode<synchronous>, transform_indices = @transform_3, window_bounds = array<i64: 27, 32>}, {pipeline_mode = #tpu.pipeline_mode<synchronous>, transform_indices = @transform_4, window_bounds = array<i64: 32, 32>}, {pipeline_mode = #tpu.pipeline_mode<synchronous>, transform_indices = @transform_5, window_bounds = array<i64: 32, 32>}, {pipeline_mode = #tpu.pipeline_mode<synchronous>, transform_indices = @transform_6, window_bounds = array<i64: 32, 32>}, {pipeline_mode = #tpu.pipeline_mode<synchronous>, transform_indices = @transform_7, window_bounds = array<i64: 32, 32>}, {pipeline_mode = #tpu.pipeline_mode<synchronous>, transform_indices = @transform_8, window_bounds = array<i64: 32, 128>}, {pipeline_mode = #tpu.pipeline_mode<synchronous>, transform_indices = @transform_9, window_bounds = array<i64: 1, 128>}, {pipeline_mode = #tpu.pipeline_mode<synchronous>, transform_indices = @transform_10, window_bounds = array<i64: 128, 32>}, {pipeline_mode = #tpu.pipeline_mode<synchronous>, transform_indices = @transform_11, window_bounds = array<i64: 32, 128>}, {pipeline_mode = #tpu.pipeline_mode<synchronous>, transform_indices = @transform_12, window_bounds = array<i64: 1, 128>}, {transform_indices = @transform_13, window_bounds = array<i64: 1, 16, 128>}]} {
    %c0_i32 = arith.constant 0 : i32
    %0 = arith.cmpi eq, %arg1, %c0_i32 : i32
    %1 = arith.extui %0 : i1 to i32
    %c0_i32_0 = arith.constant 0 : i32
    %2 = arith.cmpi ne, %1, %c0_i32_0 : i32
    scf.if %2 {
      %c0_96 = arith.constant 0 : index
      %c0_97 = arith.constant 0 : index
      %c0_98 = arith.constant 0 : index
      %222 = vector.load %arg3[%c0_96, %c0_97, %c0_98] : memref<1x8x32xbf16, #tpu.memory_space<vmem>>, vector<1x8x32xbf16>
      %223 = vector.shape_cast %222 : vector<1x8x32xbf16> to vector<8x32xbf16>
      %224 = arith.extf %223 : vector<8x32xbf16> to vector<8x32xf32>
      %c2 = arith.constant 2 : index
      %c0_99 = arith.constant 0 : index
      %225 = vector.load %arg4[%c2, %c0_99] : memref<14x32xf32, #tpu.memory_space<vmem>>, vector<1x32xf32>
      %226 = vector.shape_cast %225 : vector<1x32xf32> to vector<32xf32>
      %c3 = arith.constant 3 : index
      %c0_100 = arith.constant 0 : index
      %227 = vector.load %arg4[%c3, %c0_100] : memref<14x32xf32, #tpu.memory_space<vmem>>, vector<1x32xf32>
      %228 = vector.shape_cast %227 : vector<1x32xf32> to vector<32xf32>
      %cst_101 = arith.constant dense<0.000000e+00> : vector<8xf32>
      %229 = vector.multi_reduction <add>, %224, %cst_101 [1] : vector<8x32xf32> to vector<8xf32>
      %230 = vector.shape_cast %229 : vector<8xf32> to vector<8x1xf32>
      %cst_102 = arith.constant 3.200000e+01 : f32
      %231 = vector.broadcast %cst_102 : f32 to vector<8x1xf32>
      %232 = arith.divf %230, %231 : vector<8x1xf32>
      %233 = vector.broadcast %232 : vector<8x1xf32> to vector<8x32xf32>
      %234 = arith.subf %224, %233 : vector<8x32xf32>
      %235 = arith.mulf %234, %234 : vector<8x32xf32>
      %cst_103 = arith.constant dense<0.000000e+00> : vector<8xf32>
      %236 = vector.multi_reduction <add>, %235, %cst_103 [1] : vector<8x32xf32> to vector<8xf32>
      %237 = vector.shape_cast %236 : vector<8xf32> to vector<8x1xf32>
      %cst_104 = arith.constant 3.200000e+01 : f32
      %238 = vector.broadcast %cst_104 : f32 to vector<8x1xf32>
      %239 = arith.divf %237, %238 : vector<8x1xf32>
      %240 = vector.broadcast %232 : vector<8x1xf32> to vector<8x32xf32>
      %241 = arith.subf %224, %240 : vector<8x32xf32>
      %cst_105 = arith.constant 9.99999974E-6 : f32
      %242 = vector.broadcast %cst_105 : f32 to vector<8x1xf32>
      %243 = arith.addf %239, %242 : vector<8x1xf32>
      %244 = math.rsqrt %243 : vector<8x1xf32>
      %245 = vector.broadcast %244 : vector<8x1xf32> to vector<8x32xf32>
      %246 = arith.mulf %241, %245 : vector<8x32xf32>
      %247 = vector.shape_cast %226 : vector<32xf32> to vector<1x32xf32>
      %248 = vector.broadcast %247 : vector<1x32xf32> to vector<8x32xf32>
      %249 = arith.mulf %246, %248 : vector<8x32xf32>
      %250 = vector.shape_cast %228 : vector<32xf32> to vector<1x32xf32>
      %251 = vector.broadcast %250 : vector<1x32xf32> to vector<8x32xf32>
      %252 = arith.addf %249, %251 : vector<8x32xf32>
      %253 = arith.truncf %252 : vector<8x32xf32> to vector<8x32xbf16>
      %c0_106 = arith.constant 0 : index
      %c0_107 = arith.constant 0 : index
      %254 = vector.load %arg7[%c0_106, %c0_107] : memref<32x32xbf16, #tpu.memory_space<vmem>>, vector<32x32xbf16>
      %cst_108 = arith.constant dense<0.000000e+00> : vector<8x32xf32>
      %255 = tpu.matmul %253, %254, %cst_108 {dimension_numbers = #tpu.dot_dimension_numbers<[1], [0], [0], [1], [0, 0, 1, 1], [], []>} : vector<8x32xbf16>, vector<32x32xbf16>, vector<8x32xf32> -> vector<8x32xf32>
      %c10 = arith.constant 10 : index
      %c0_109 = arith.constant 0 : index
      %256 = vector.load %arg4[%c10, %c0_109] : memref<14x32xf32, #tpu.memory_space<vmem>>, vector<1x32xf32>
      %257 = vector.shape_cast %256 : vector<1x32xf32> to vector<32xf32>
      %258 = vector.shape_cast %257 : vector<32xf32> to vector<1x32xf32>
      %259 = vector.broadcast %258 : vector<1x32xf32> to vector<8x32xf32>
      %260 = arith.addf %255, %259 : vector<8x32xf32>
      %c0_110 = arith.constant 0 : index
      %c0_111 = arith.constant 0 : index
      %261 = vector.load %arg8[%c0_110, %c0_111] : memref<32x32xbf16, #tpu.memory_space<vmem>>, vector<32x32xbf16>
      %cst_112 = arith.constant dense<0.000000e+00> : vector<8x32xf32>
      %262 = tpu.matmul %253, %261, %cst_112 {dimension_numbers = #tpu.dot_dimension_numbers<[1], [0], [0], [1], [0, 0, 1, 1], [], []>} : vector<8x32xbf16>, vector<32x32xbf16>, vector<8x32xf32> -> vector<8x32xf32>
      %c11 = arith.constant 11 : index
      %c0_113 = arith.constant 0 : index
      %263 = vector.load %arg4[%c11, %c0_113] : memref<14x32xf32, #tpu.memory_space<vmem>>, vector<1x32xf32>
      %264 = vector.shape_cast %263 : vector<1x32xf32> to vector<32xf32>
      %265 = vector.shape_cast %264 : vector<32xf32> to vector<1x32xf32>
      %266 = vector.broadcast %265 : vector<1x32xf32> to vector<8x32xf32>
      %267 = arith.addf %262, %266 : vector<8x32xf32>
      %268 = arith.truncf %260 : vector<8x32xf32> to vector<8x32xbf16>
      %c0_114 = arith.constant 0 : index
      %c0_115 = arith.constant 0 : index
      %269 = vector.load %arg16[%c0_114, %c0_115] : memref<8x32xbf16, #tpu.memory_space<vmem>>, vector<8x32xbf16>
      tpu.vector_store %arg16[%c0_114, %c0_115], %268 {strides = array<i32>} : memref<8x32xbf16, #tpu.memory_space<vmem>>, vector<8x32xbf16>,
      %270 = arith.truncf %267 : vector<8x32xf32> to vector<8x32xbf16>
      %c0_116 = arith.constant 0 : index
      %c0_117 = arith.constant 0 : index
      %271 = vector.load %arg17[%c0_116, %c0_117] : memref<8x32xbf16, #tpu.memory_space<vmem>>, vector<8x32xbf16>
      tpu.vector_store %arg17[%c0_116, %c0_117], %270 {strides = array<i32>} : memref<8x32xbf16, #tpu.memory_space<vmem>>, vector<8x32xbf16>,
    } else {
    }
    %c0 = arith.constant 0 : index
    %c0_1 = arith.constant 0 : index
    %c0_2 = arith.constant 0 : index
    %3 = vector.load %arg2[%c0, %c0_1, %c0_2] : memref<1x16x27xbf16, #tpu.memory_space<vmem>>, vector<1x16x27xbf16>
    %4 = vector.shape_cast %3 : vector<1x16x27xbf16> to vector<16x27xbf16>
    %c0_3 = arith.constant 0 : index
    %c0_4 = arith.constant 0 : index
    %5 = vector.load %arg5[%c0_3, %c0_4] : memref<27x32xbf16, #tpu.memory_space<vmem>>, vector<27x32xbf16>
    %cst = arith.constant dense<0.000000e+00> : vector<16x32xf32>
    %6 = tpu.matmul %4, %5, %cst {dimension_numbers = #tpu.dot_dimension_numbers<[1], [0], [0], [1], [0, 0, 1, 1], [], []>} : vector<16x27xbf16>, vector<27x32xbf16>, vector<16x32xf32> -> vector<16x32xf32>
    %c8 = arith.constant 8 : index
    %c0_5 = arith.constant 0 : index
    %7 = vector.load %arg4[%c8, %c0_5] : memref<14x32xf32, #tpu.memory_space<vmem>>, vector<1x32xf32>
    %8 = vector.shape_cast %7 : vector<1x32xf32> to vector<32xf32>
    %9 = vector.shape_cast %8 : vector<32xf32> to vector<1x32xf32>
    %10 = vector.broadcast %9 : vector<1x32xf32> to vector<16x32xf32>
    %11 = arith.addf %6, %10 : vector<16x32xf32>
    %c0_6 = arith.constant 0 : index
    %c0_7 = arith.constant 0 : index
    %12 = vector.load %arg4[%c0_6, %c0_7] : memref<14x32xf32, #tpu.memory_space<vmem>>, vector<1x32xf32>
    %13 = vector.shape_cast %12 : vector<1x32xf32> to vector<32xf32>
    %c1 = arith.constant 1 : index
    %c0_8 = arith.constant 0 : index
    %14 = vector.load %arg4[%c1, %c0_8] : memref<14x32xf32, #tpu.memory_space<vmem>>, vector<1x32xf32>
    %15 = vector.shape_cast %14 : vector<1x32xf32> to vector<32xf32>
    %cst_9 = arith.constant dense<0.000000e+00> : vector<16xf32>
    %16 = vector.multi_reduction <add>, %11, %cst_9 [1] : vector<16x32xf32> to vector<16xf32>
    %17 = vector.shape_cast %16 : vector<16xf32> to vector<16x1xf32>
    %cst_10 = arith.constant 3.200000e+01 : f32
    %18 = vector.broadcast %cst_10 : f32 to vector<16x1xf32>
    %19 = arith.divf %17, %18 : vector<16x1xf32>
    %20 = vector.broadcast %19 : vector<16x1xf32> to vector<16x32xf32>
    %21 = arith.subf %11, %20 : vector<16x32xf32>
    %22 = arith.mulf %21, %21 : vector<16x32xf32>
    %cst_11 = arith.constant dense<0.000000e+00> : vector<16xf32>
    %23 = vector.multi_reduction <add>, %22, %cst_11 [1] : vector<16x32xf32> to vector<16xf32>
    %24 = vector.shape_cast %23 : vector<16xf32> to vector<16x1xf32>
    %cst_12 = arith.constant 3.200000e+01 : f32
    %25 = vector.broadcast %cst_12 : f32 to vector<16x1xf32>
    %26 = arith.divf %24, %25 : vector<16x1xf32>
    %27 = vector.broadcast %19 : vector<16x1xf32> to vector<16x32xf32>
    %28 = arith.subf %11, %27 : vector<16x32xf32>
    %cst_13 = arith.constant 9.99999974E-6 : f32
    %29 = vector.broadcast %cst_13 : f32 to vector<16x1xf32>
    %30 = arith.addf %26, %29 : vector<16x1xf32>
    %31 = math.rsqrt %30 : vector<16x1xf32>
    %32 = vector.broadcast %31 : vector<16x1xf32> to vector<16x32xf32>
    %33 = arith.mulf %28, %32 : vector<16x32xf32>
    %34 = vector.shape_cast %13 : vector<32xf32> to vector<1x32xf32>
    %35 = vector.broadcast %34 : vector<1x32xf32> to vector<16x32xf32>
    %36 = arith.mulf %33, %35 : vector<16x32xf32>
    %37 = vector.shape_cast %15 : vector<32xf32> to vector<1x32xf32>
    %38 = vector.broadcast %37 : vector<1x32xf32> to vector<16x32xf32>
    %39 = arith.addf %36, %38 : vector<16x32xf32>
    %40 = arith.truncf %39 : vector<16x32xf32> to vector<16x32xbf16>
    %c0_14 = arith.constant 0 : index
    %c0_15 = arith.constant 0 : index
    %41 = vector.load %arg6[%c0_14, %c0_15] : memref<32x32xbf16, #tpu.memory_space<vmem>>, vector<32x32xbf16>
    %cst_16 = arith.constant dense<0.000000e+00> : vector<16x32xf32>
    %42 = tpu.matmul %40, %41, %cst_16 {dimension_numbers = #tpu.dot_dimension_numbers<[1], [0], [0], [1], [0, 0, 1, 1], [], []>} : vector<16x32xbf16>, vector<32x32xbf16>, vector<16x32xf32> -> vector<16x32xf32>
    %c9 = arith.constant 9 : index
    %c0_17 = arith.constant 0 : index
    %43 = vector.load %arg4[%c9, %c0_17] : memref<14x32xf32, #tpu.memory_space<vmem>>, vector<1x32xf32>
    %44 = vector.shape_cast %43 : vector<1x32xf32> to vector<32xf32>
    %45 = vector.shape_cast %44 : vector<32xf32> to vector<1x32xf32>
    %46 = vector.broadcast %45 : vector<1x32xf32> to vector<16x32xf32>
    %47 = arith.addf %42, %46 : vector<16x32xf32>
    %48 = arith.truncf %47 : vector<16x32xf32> to vector<16x32xbf16>
    %49 = vector.extract_strided_slice %48 {offsets = [0, 0], sizes = [16, 8], strides = [1, 1]} : vector<16x32xbf16> to vector<16x8xbf16>
    %c0_18 = arith.constant 0 : index
    %c0_19 = arith.constant 0 : index
    %50 = vector.load %arg16[%c0_18, %c0_19] : memref<8x32xbf16, #tpu.memory_space<vmem>>, vector<8x8xbf16>
    %c0_20 = arith.constant 0 : index
    %c0_21 = arith.constant 0 : index
    %51 = vector.load %arg17[%c0_20, %c0_21] : memref<8x32xbf16, #tpu.memory_space<vmem>>, vector<8x8xbf16>
    %cst_22 = arith.constant dense<0.000000e+00> : vector<16x8xf32>
    %52 = tpu.matmul %49, %50, %cst_22 {dimension_numbers = #tpu.dot_dimension_numbers<[1], [1], [0], [0], [0, 0, 1, 0], [], []>} : vector<16x8xbf16>, vector<8x8xbf16>, vector<16x8xf32> -> vector<16x8xf32>
    %cst_23 = arith.constant dense<0xFF800000> : vector<16xf32>
    %53 = vector.multi_reduction <maximumf>, %52, %cst_23 [1] : vector<16x8xf32> to vector<16xf32>
    %54 = vector.shape_cast %53 : vector<16xf32> to vector<16x1xf32>
    %55 = vector.broadcast %54 : vector<16x1xf32> to vector<16x8xf32>
    %56 = arith.subf %52, %55 : vector<16x8xf32>
    %57 = math.exp %56 : vector<16x8xf32>
    %cst_24 = arith.constant dense<0.000000e+00> : vector<16xf32>
    %58 = vector.multi_reduction <add>, %57, %cst_24 [1] : vector<16x8xf32> to vector<16xf32>
    %59 = vector.shape_cast %58 : vector<16xf32> to vector<16x1xf32>
    %60 = tpu.reciprocal %59 {approx = true} : vector<16x1xf32> -> vector<16x1xf32>
    %61 = vector.broadcast %60 : vector<16x1xf32> to vector<16x8xf32>
    %62 = arith.mulf %57, %61 : vector<16x8xf32>
    %63 = arith.truncf %62 : vector<16x8xf32> to vector<16x8xbf16>
    %cst_25 = arith.constant dense<0.000000e+00> : vector<16x8xf32>
    %64 = tpu.matmul %63, %51, %cst_25 {dimension_numbers = #tpu.dot_dimension_numbers<[1], [0], [0], [1], [0, 0, 1, 1], [], []>} : vector<16x8xbf16>, vector<8x8xbf16>, vector<16x8xf32> -> vector<16x8xf32>
    %65 = arith.truncf %64 : vector<16x8xf32> to vector<16x8xbf16>
    %c0_26 = arith.constant 0 : index
    %c0_27 = arith.constant 0 : index
    %66 = vector.load %arg18[%c0_26, %c0_27] : memref<16x32xbf16, #tpu.memory_space<vmem>>, vector<16x8xbf16>
    tpu.vector_store %arg18[%c0_26, %c0_27], %65 {strides = array<i32>} : memref<16x32xbf16, #tpu.memory_space<vmem>>, vector<16x8xbf16>,
    %67 = vector.extract_strided_slice %48 {offsets = [0, 8], sizes = [16, 8], strides = [1, 1]} : vector<16x32xbf16> to vector<16x8xbf16>
    %c0_28 = arith.constant 0 : index
    %c8_29 = arith.constant 8 : index
    %68 = vector.load %arg16[%c0_28, %c8_29] : memref<8x32xbf16, #tpu.memory_space<vmem>>, vector<8x8xbf16>
    %c0_30 = arith.constant 0 : index
    %c8_31 = arith.constant 8 : index
    %69 = vector.load %arg17[%c0_30, %c8_31] : memref<8x32xbf16, #tpu.memory_space<vmem>>, vector<8x8xbf16>
    %cst_32 = arith.constant dense<0.000000e+00> : vector<16x8xf32>
    %70 = tpu.matmul %67, %68, %cst_32 {dimension_numbers = #tpu.dot_dimension_numbers<[1], [1], [0], [0], [0, 0, 1, 0], [], []>} : vector<16x8xbf16>, vector<8x8xbf16>, vector<16x8xf32> -> vector<16x8xf32>
    %cst_33 = arith.constant dense<0xFF800000> : vector<16xf32>
    %71 = vector.multi_reduction <maximumf>, %70, %cst_33 [1] : vector<16x8xf32> to vector<16xf32>
    %72 = vector.shape_cast %71 : vector<16xf32> to vector<16x1xf32>
    %73 = vector.broadcast %72 : vector<16x1xf32> to vector<16x8xf32>
    %74 = arith.subf %70, %73 : vector<16x8xf32>
    %75 = math.exp %74 : vector<16x8xf32>
    %cst_34 = arith.constant dense<0.000000e+00> : vector<16xf32>
    %76 = vector.multi_reduction <add>, %75, %cst_34 [1] : vector<16x8xf32> to vector<16xf32>
    %77 = vector.shape_cast %76 : vector<16xf32> to vector<16x1xf32>
    %78 = tpu.reciprocal %77 {approx = true} : vector<16x1xf32> -> vector<16x1xf32>
    %79 = vector.broadcast %78 : vector<16x1xf32> to vector<16x8xf32>
    %80 = arith.mulf %75, %79 : vector<16x8xf32>
    %81 = arith.truncf %80 : vector<16x8xf32> to vector<16x8xbf16>
    %cst_35 = arith.constant dense<0.000000e+00> : vector<16x8xf32>
    %82 = tpu.matmul %81, %69, %cst_35 {dimension_numbers = #tpu.dot_dimension_numbers<[1], [0], [0], [1], [0, 0, 1, 1], [], []>} : vector<16x8xbf16>, vector<8x8xbf16>, vector<16x8xf32> -> vector<16x8xf32>
    %83 = arith.truncf %82 : vector<16x8xf32> to vector<16x8xbf16>
    %c0_36 = arith.constant 0 : index
    %c8_37 = arith.constant 8 : index
    %84 = vector.load %arg18[%c0_36, %c8_37] : memref<16x32xbf16, #tpu.memory_space<vmem>>, vector<16x8xbf16>
    tpu.vector_store %arg18[%c0_36, %c8_37], %83 {strides = array<i32>} : memref<16x32xbf16, #tpu.memory_space<vmem>>, vector<16x8xbf16>,
    %85 = vector.extract_strided_slice %48 {offsets = [0, 16], sizes = [16, 8], strides = [1, 1]} : vector<16x32xbf16> to vector<16x8xbf16>
    %c0_38 = arith.constant 0 : index
    %c16 = arith.constant 16 : index
    %86 = vector.load %arg16[%c0_38, %c16] : memref<8x32xbf16, #tpu.memory_space<vmem>>, vector<8x8xbf16>
    %c0_39 = arith.constant 0 : index
    %c16_40 = arith.constant 16 : index
    %87 = vector.load %arg17[%c0_39, %c16_40] : memref<8x32xbf16, #tpu.memory_space<vmem>>, vector<8x8xbf16>
    %cst_41 = arith.constant dense<0.000000e+00> : vector<16x8xf32>
    %88 = tpu.matmul %85, %86, %cst_41 {dimension_numbers = #tpu.dot_dimension_numbers<[1], [1], [0], [0], [0, 0, 1, 0], [], []>} : vector<16x8xbf16>, vector<8x8xbf16>, vector<16x8xf32> -> vector<16x8xf32>
    %cst_42 = arith.constant dense<0xFF800000> : vector<16xf32>
    %89 = vector.multi_reduction <maximumf>, %88, %cst_42 [1] : vector<16x8xf32> to vector<16xf32>
    %90 = vector.shape_cast %89 : vector<16xf32> to vector<16x1xf32>
    %91 = vector.broadcast %90 : vector<16x1xf32> to vector<16x8xf32>
    %92 = arith.subf %88, %91 : vector<16x8xf32>
    %93 = math.exp %92 : vector<16x8xf32>
    %cst_43 = arith.constant dense<0.000000e+00> : vector<16xf32>
    %94 = vector.multi_reduction <add>, %93, %cst_43 [1] : vector<16x8xf32> to vector<16xf32>
    %95 = vector.shape_cast %94 : vector<16xf32> to vector<16x1xf32>
    %96 = tpu.reciprocal %95 {approx = true} : vector<16x1xf32> -> vector<16x1xf32>
    %97 = vector.broadcast %96 : vector<16x1xf32> to vector<16x8xf32>
    %98 = arith.mulf %93, %97 : vector<16x8xf32>
    %99 = arith.truncf %98 : vector<16x8xf32> to vector<16x8xbf16>
    %cst_44 = arith.constant dense<0.000000e+00> : vector<16x8xf32>
    %100 = tpu.matmul %99, %87, %cst_44 {dimension_numbers = #tpu.dot_dimension_numbers<[1], [0], [0], [1], [0, 0, 1, 1], [], []>} : vector<16x8xbf16>, vector<8x8xbf16>, vector<16x8xf32> -> vector<16x8xf32>
    %101 = arith.truncf %100 : vector<16x8xf32> to vector<16x8xbf16>
    %c0_45 = arith.constant 0 : index
    %c16_46 = arith.constant 16 : index
    %102 = vector.load %arg18[%c0_45, %c16_46] : memref<16x32xbf16, #tpu.memory_space<vmem>>, vector<16x8xbf16>
    tpu.vector_store %arg18[%c0_45, %c16_46], %101 {strides = array<i32>} : memref<16x32xbf16, #tpu.memory_space<vmem>>, vector<16x8xbf16>,
    %103 = vector.extract_strided_slice %48 {offsets = [0, 24], sizes = [16, 8], strides = [1, 1]} : vector<16x32xbf16> to vector<16x8xbf16>
    %c0_47 = arith.constant 0 : index
    %c24 = arith.constant 24 : index
    %104 = vector.load %arg16[%c0_47, %c24] : memref<8x32xbf16, #tpu.memory_space<vmem>>, vector<8x8xbf16>
    %c0_48 = arith.constant 0 : index
    %c24_49 = arith.constant 24 : index
    %105 = vector.load %arg17[%c0_48, %c24_49] : memref<8x32xbf16, #tpu.memory_space<vmem>>, vector<8x8xbf16>
    %cst_50 = arith.constant dense<0.000000e+00> : vector<16x8xf32>
    %106 = tpu.matmul %103, %104, %cst_50 {dimension_numbers = #tpu.dot_dimension_numbers<[1], [1], [0], [0], [0, 0, 1, 0], [], []>} : vector<16x8xbf16>, vector<8x8xbf16>, vector<16x8xf32> -> vector<16x8xf32>
    %cst_51 = arith.constant dense<0xFF800000> : vector<16xf32>
    %107 = vector.multi_reduction <maximumf>, %106, %cst_51 [1] : vector<16x8xf32> to vector<16xf32>
    %108 = vector.shape_cast %107 : vector<16xf32> to vector<16x1xf32>
    %109 = vector.broadcast %108 : vector<16x1xf32> to vector<16x8xf32>
    %110 = arith.subf %106, %109 : vector<16x8xf32>
    %111 = math.exp %110 : vector<16x8xf32>
    %cst_52 = arith.constant dense<0.000000e+00> : vector<16xf32>
    %112 = vector.multi_reduction <add>, %111, %cst_52 [1] : vector<16x8xf32> to vector<16xf32>
    %113 = vector.shape_cast %112 : vector<16xf32> to vector<16x1xf32>
    %114 = tpu.reciprocal %113 {approx = true} : vector<16x1xf32> -> vector<16x1xf32>
    %115 = vector.broadcast %114 : vector<16x1xf32> to vector<16x8xf32>
    %116 = arith.mulf %111, %115 : vector<16x8xf32>
    %117 = arith.truncf %116 : vector<16x8xf32> to vector<16x8xbf16>
    %cst_53 = arith.constant dense<0.000000e+00> : vector<16x8xf32>
    %118 = tpu.matmul %117, %105, %cst_53 {dimension_numbers = #tpu.dot_dimension_numbers<[1], [0], [0], [1], [0, 0, 1, 1], [], []>} : vector<16x8xbf16>, vector<8x8xbf16>, vector<16x8xf32> -> vector<16x8xf32>
    %119 = arith.truncf %118 : vector<16x8xf32> to vector<16x8xbf16>
    %c0_54 = arith.constant 0 : index
    %c24_55 = arith.constant 24 : index
    %120 = vector.load %arg18[%c0_54, %c24_55] : memref<16x32xbf16, #tpu.memory_space<vmem>>, vector<16x8xbf16>
    tpu.vector_store %arg18[%c0_54, %c24_55], %119 {strides = array<i32>} : memref<16x32xbf16, #tpu.memory_space<vmem>>, vector<16x8xbf16>,
    %c0_56 = arith.constant 0 : index
    %c0_57 = arith.constant 0 : index
    %121 = vector.load %arg18[%c0_56, %c0_57] : memref<16x32xbf16, #tpu.memory_space<vmem>>, vector<16x32xbf16>
    %c0_58 = arith.constant 0 : index
    %c0_59 = arith.constant 0 : index
    %122 = vector.load %arg9[%c0_58, %c0_59] : memref<32x32xbf16, #tpu.memory_space<vmem>>, vector<32x32xbf16>
    %cst_60 = arith.constant dense<0.000000e+00> : vector<16x32xf32>
    %123 = tpu.matmul %121, %122, %cst_60 {dimension_numbers = #tpu.dot_dimension_numbers<[1], [0], [0], [1], [0, 0, 1, 1], [], []>} : vector<16x32xbf16>, vector<32x32xbf16>, vector<16x32xf32> -> vector<16x32xf32>
    %c12 = arith.constant 12 : index
    %c0_61 = arith.constant 0 : index
    %124 = vector.load %arg4[%c12, %c0_61] : memref<14x32xf32, #tpu.memory_space<vmem>>, vector<1x32xf32>
    %125 = vector.shape_cast %124 : vector<1x32xf32> to vector<32xf32>
    %126 = vector.shape_cast %125 : vector<32xf32> to vector<1x32xf32>
    %127 = vector.broadcast %126 : vector<1x32xf32> to vector<16x32xf32>
    %128 = arith.addf %123, %127 : vector<16x32xf32>
    %129 = arith.addf %11, %128 : vector<16x32xf32>
    %c4 = arith.constant 4 : index
    %c0_62 = arith.constant 0 : index
    %130 = vector.load %arg4[%c4, %c0_62] : memref<14x32xf32, #tpu.memory_space<vmem>>, vector<1x32xf32>
    %131 = vector.shape_cast %130 : vector<1x32xf32> to vector<32xf32>
    %c5 = arith.constant 5 : index
    %c0_63 = arith.constant 0 : index
    %132 = vector.load %arg4[%c5, %c0_63] : memref<14x32xf32, #tpu.memory_space<vmem>>, vector<1x32xf32>
    %133 = vector.shape_cast %132 : vector<1x32xf32> to vector<32xf32>
    %cst_64 = arith.constant dense<0.000000e+00> : vector<16xf32>
    %134 = vector.multi_reduction <add>, %129, %cst_64 [1] : vector<16x32xf32> to vector<16xf32>
    %135 = vector.shape_cast %134 : vector<16xf32> to vector<16x1xf32>
    %cst_65 = arith.constant 3.200000e+01 : f32
    %136 = vector.broadcast %cst_65 : f32 to vector<16x1xf32>
    %137 = arith.divf %135, %136 : vector<16x1xf32>
    %138 = vector.broadcast %137 : vector<16x1xf32> to vector<16x32xf32>
    %139 = arith.subf %129, %138 : vector<16x32xf32>
    %140 = arith.mulf %139, %139 : vector<16x32xf32>
    %cst_66 = arith.constant dense<0.000000e+00> : vector<16xf32>
    %141 = vector.multi_reduction <add>, %140, %cst_66 [1] : vector<16x32xf32> to vector<16xf32>
    %142 = vector.shape_cast %141 : vector<16xf32> to vector<16x1xf32>
    %cst_67 = arith.constant 3.200000e+01 : f32
    %143 = vector.broadcast %cst_67 : f32 to vector<16x1xf32>
    %144 = arith.divf %142, %143 : vector<16x1xf32>
    %145 = vector.broadcast %137 : vector<16x1xf32> to vector<16x32xf32>
    %146 = arith.subf %129, %145 : vector<16x32xf32>
    %cst_68 = arith.constant 9.99999974E-6 : f32
    %147 = vector.broadcast %cst_68 : f32 to vector<16x1xf32>
    %148 = arith.addf %144, %147 : vector<16x1xf32>
    %149 = math.rsqrt %148 : vector<16x1xf32>
    %150 = vector.broadcast %149 : vector<16x1xf32> to vector<16x32xf32>
    %151 = arith.mulf %146, %150 : vector<16x32xf32>
    %152 = vector.shape_cast %131 : vector<32xf32> to vector<1x32xf32>
    %153 = vector.broadcast %152 : vector<1x32xf32> to vector<16x32xf32>
    %154 = arith.mulf %151, %153 : vector<16x32xf32>
    %155 = vector.shape_cast %133 : vector<32xf32> to vector<1x32xf32>
    %156 = vector.broadcast %155 : vector<1x32xf32> to vector<16x32xf32>
    %157 = arith.addf %154, %156 : vector<16x32xf32>
    %158 = arith.truncf %157 : vector<16x32xf32> to vector<16x32xbf16>
    %c0_69 = arith.constant 0 : index
    %c0_70 = arith.constant 0 : index
    %159 = vector.load %arg10[%c0_69, %c0_70] : memref<32x128xbf16, #tpu.memory_space<vmem>>, vector<32x128xbf16>
    %cst_71 = arith.constant dense<0.000000e+00> : vector<16x128xf32>
    %160 = tpu.matmul %158, %159, %cst_71 {dimension_numbers = #tpu.dot_dimension_numbers<[1], [0], [0], [1], [0, 0, 1, 1], [], []>} : vector<16x32xbf16>, vector<32x128xbf16>, vector<16x128xf32> -> vector<16x128xf32>
    %c0_72 = arith.constant 0 : index
    %c0_73 = arith.constant 0 : index
    %161 = vector.load %arg11[%c0_72, %c0_73] : memref<1x128xf32, #tpu.memory_space<vmem>>, vector<1x128xf32>
    %162 = vector.shape_cast %161 : vector<1x128xf32> to vector<128xf32>
    %163 = vector.shape_cast %162 : vector<128xf32> to vector<1x128xf32>
    %164 = vector.broadcast %163 : vector<1x128xf32> to vector<16x128xf32>
    %165 = arith.addf %160, %164 : vector<16x128xf32>
    %cst_74 = arith.constant 5.000000e-01 : f32
    %166 = vector.broadcast %cst_74 : f32 to vector<16x128xf32>
    %167 = arith.mulf %166, %165 : vector<16x128xf32>
    %cst_75 = arith.constant 0.707106769 : f32
    %168 = vector.broadcast %cst_75 : f32 to vector<16x128xf32>
    %169 = arith.mulf %165, %168 : vector<16x128xf32>
    %170 = math.erf %169 : vector<16x128xf32>
    %cst_76 = arith.constant 1.000000e+00 : f32
    %171 = vector.broadcast %cst_76 : f32 to vector<16x128xf32>
    %172 = arith.addf %171, %170 : vector<16x128xf32>
    %173 = arith.mulf %167, %172 : vector<16x128xf32>
    %174 = arith.truncf %173 : vector<16x128xf32> to vector<16x128xbf16>
    %c0_77 = arith.constant 0 : index
    %c0_78 = arith.constant 0 : index
    %175 = vector.load %arg12[%c0_77, %c0_78] : memref<128x32xbf16, #tpu.memory_space<vmem>>, vector<128x32xbf16>
    %cst_79 = arith.constant dense<0.000000e+00> : vector<16x32xf32>
    %176 = tpu.matmul %174, %175, %cst_79 {dimension_numbers = #tpu.dot_dimension_numbers<[1], [0], [0], [1], [0, 0, 1, 1], [], []>} : vector<16x128xbf16>, vector<128x32xbf16>, vector<16x32xf32> -> vector<16x32xf32>
    %177 = arith.addf %129, %176 : vector<16x32xf32>
    %c13 = arith.constant 13 : index
    %c0_80 = arith.constant 0 : index
    %178 = vector.load %arg4[%c13, %c0_80] : memref<14x32xf32, #tpu.memory_space<vmem>>, vector<1x32xf32>
    %179 = vector.shape_cast %178 : vector<1x32xf32> to vector<32xf32>
    %180 = vector.shape_cast %179 : vector<32xf32> to vector<1x32xf32>
    %181 = vector.broadcast %180 : vector<1x32xf32> to vector<16x32xf32>
    %182 = arith.addf %177, %181 : vector<16x32xf32>
    %c6 = arith.constant 6 : index
    %c0_81 = arith.constant 0 : index
    %183 = vector.load %arg4[%c6, %c0_81] : memref<14x32xf32, #tpu.memory_space<vmem>>, vector<1x32xf32>
    %184 = vector.shape_cast %183 : vector<1x32xf32> to vector<32xf32>
    %c7 = arith.constant 7 : index
    %c0_82 = arith.constant 0 : index
    %185 = vector.load %arg4[%c7, %c0_82] : memref<14x32xf32, #tpu.memory_space<vmem>>, vector<1x32xf32>
    %186 = vector.shape_cast %185 : vector<1x32xf32> to vector<32xf32>
    %cst_83 = arith.constant dense<0.000000e+00> : vector<16xf32>
    %187 = vector.multi_reduction <add>, %182, %cst_83 [1] : vector<16x32xf32> to vector<16xf32>
    %188 = vector.shape_cast %187 : vector<16xf32> to vector<16x1xf32>
    %cst_84 = arith.constant 3.200000e+01 : f32
    %189 = vector.broadcast %cst_84 : f32 to vector<16x1xf32>
    %190 = arith.divf %188, %189 : vector<16x1xf32>
    %191 = vector.broadcast %190 : vector<16x1xf32> to vector<16x32xf32>
    %192 = arith.subf %182, %191 : vector<16x32xf32>
    %193 = arith.mulf %192, %192 : vector<16x32xf32>
    %cst_85 = arith.constant dense<0.000000e+00> : vector<16xf32>
    %194 = vector.multi_reduction <add>, %193, %cst_85 [1] : vector<16x32xf32> to vector<16xf32>
    %195 = vector.shape_cast %194 : vector<16xf32> to vector<16x1xf32>
    %cst_86 = arith.constant 3.200000e+01 : f32
    %196 = vector.broadcast %cst_86 : f32 to vector<16x1xf32>
    %197 = arith.divf %195, %196 : vector<16x1xf32>
    %198 = vector.broadcast %190 : vector<16x1xf32> to vector<16x32xf32>
    %199 = arith.subf %182, %198 : vector<16x32xf32>
    %cst_87 = arith.constant 9.99999974E-6 : f32
    %200 = vector.broadcast %cst_87 : f32 to vector<16x1xf32>
    %201 = arith.addf %197, %200 : vector<16x1xf32>
    %202 = math.rsqrt %201 : vector<16x1xf32>
    %203 = vector.broadcast %202 : vector<16x1xf32> to vector<16x32xf32>
    %204 = arith.mulf %199, %203 : vector<16x32xf32>
    %205 = vector.shape_cast %184 : vector<32xf32> to vector<1x32xf32>
    %206 = vector.broadcast %205 : vector<1x32xf32> to vector<16x32xf32>
    %207 = arith.mulf %204, %206 : vector<16x32xf32>
    %208 = vector.shape_cast %186 : vector<32xf32> to vector<1x32xf32>
    %209 = vector.broadcast %208 : vector<1x32xf32> to vector<16x32xf32>
    %210 = arith.addf %207, %209 : vector<16x32xf32>
    %211 = arith.truncf %210 : vector<16x32xf32> to vector<16x32xbf16>
    %c0_88 = arith.constant 0 : index
    %c0_89 = arith.constant 0 : index
    %212 = vector.load %arg13[%c0_88, %c0_89] : memref<32x128xbf16, #tpu.memory_space<vmem>>, vector<32x128xbf16>
    %cst_90 = arith.constant dense<0.000000e+00> : vector<16x128xf32>
    %213 = tpu.matmul %211, %212, %cst_90 {dimension_numbers = #tpu.dot_dimension_numbers<[1], [0], [0], [1], [0, 0, 1, 1], [], []>} : vector<16x32xbf16>, vector<32x128xbf16>, vector<16x128xf32> -> vector<16x128xf32>
    %c0_91 = arith.constant 0 : index
    %c0_92 = arith.constant 0 : index
    %214 = vector.load %arg14[%c0_91, %c0_92] : memref<1x128xf32, #tpu.memory_space<vmem>>, vector<1x128xf32>
    %215 = vector.shape_cast %214 : vector<1x128xf32> to vector<128xf32>
    %216 = vector.shape_cast %215 : vector<128xf32> to vector<1x128xf32>
    %217 = vector.broadcast %216 : vector<1x128xf32> to vector<16x128xf32>
    %218 = arith.addf %213, %217 : vector<16x128xf32>
    %c0_93 = arith.constant 0 : index
    %c0_94 = arith.constant 0 : index
    %c0_95 = arith.constant 0 : index
    %219 = vector.load %arg15[%c0_93, %c0_94, %c0_95] : memref<1x16x128xf32, #tpu.memory_space<vmem>>, vector<1x16x128xf32>
    %220 = vector.shape_cast %219 : vector<1x16x128xf32> to vector<16x128xf32>
    %221 = vector.shape_cast %218 : vector<16x128xf32> to vector<1x16x128xf32>
    tpu.vector_store %arg15[%c0_93, %c0_94, %c0_95], %221 {strides = array<i32>} : memref<1x16x128xf32, #tpu.memory_space<vmem>>, vector<1x16x128xf32>,
    return
  }
  func.func @transform_0(%arg0: i32, %arg1: i32) -> (i32, i32, i32) {
    %c0_i32 = arith.constant 0 : i32
    %c0_i32_0 = arith.constant 0 : i32
    return %arg0, %arg1, %c0_i32 : i32, i32, i32
  }
  func.func @transform_1(%arg0: i32, %arg1: i32) -> (i32, i32, i32) {
    %c0_i32 = arith.constant 0 : i32
    %c0_i32_0 = arith.constant 0 : i32
    %c0_i32_1 = arith.constant 0 : i32
    return %arg0, %c0_i32, %c0_i32_0 : i32, i32, i32
  }
  func.func @transform_2(%arg0: i32, %arg1: i32) -> (i32, i32) {
    %c0_i32 = arith.constant 0 : i32
    %c0_i32_0 = arith.constant 0 : i32
    %c0_i32_1 = arith.constant 0 : i32
    return %c0_i32, %c0_i32_0 : i32, i32
  }
  func.func @transform_3(%arg0: i32, %arg1: i32) -> (i32, i32) {
    %c0_i32 = arith.constant 0 : i32
    %c0_i32_0 = arith.constant 0 : i32
    %c0_i32_1 = arith.constant 0 : i32
    return %c0_i32, %c0_i32_0 : i32, i32
  }
  func.func @transform_4(%arg0: i32, %arg1: i32) -> (i32, i32) {
    %c0_i32 = arith.constant 0 : i32
    %c0_i32_0 = arith.constant 0 : i32
    %c0_i32_1 = arith.constant 0 : i32
    return %c0_i32, %c0_i32_0 : i32, i32
  }
  func.func @transform_5(%arg0: i32, %arg1: i32) -> (i32, i32) {
    %c0_i32 = arith.constant 0 : i32
    %c0_i32_0 = arith.constant 0 : i32
    %c0_i32_1 = arith.constant 0 : i32
    return %c0_i32, %c0_i32_0 : i32, i32
  }
  func.func @transform_6(%arg0: i32, %arg1: i32) -> (i32, i32) {
    %c0_i32 = arith.constant 0 : i32
    %c0_i32_0 = arith.constant 0 : i32
    %c0_i32_1 = arith.constant 0 : i32
    return %c0_i32, %c0_i32_0 : i32, i32
  }
  func.func @transform_7(%arg0: i32, %arg1: i32) -> (i32, i32) {
    %c0_i32 = arith.constant 0 : i32
    %c0_i32_0 = arith.constant 0 : i32
    %c0_i32_1 = arith.constant 0 : i32
    return %c0_i32, %c0_i32_0 : i32, i32
  }
  func.func @transform_8(%arg0: i32, %arg1: i32) -> (i32, i32) {
    %c0_i32 = arith.constant 0 : i32
    %c0_i32_0 = arith.constant 0 : i32
    %c0_i32_1 = arith.constant 0 : i32
    return %c0_i32, %c0_i32_0 : i32, i32
  }
  func.func @transform_9(%arg0: i32, %arg1: i32) -> (i32, i32) {
    %c0_i32 = arith.constant 0 : i32
    %c0_i32_0 = arith.constant 0 : i32
    %c0_i32_1 = arith.constant 0 : i32
    return %c0_i32, %c0_i32_0 : i32, i32
  }
  func.func @transform_10(%arg0: i32, %arg1: i32) -> (i32, i32) {
    %c0_i32 = arith.constant 0 : i32
    %c0_i32_0 = arith.constant 0 : i32
    %c0_i32_1 = arith.constant 0 : i32
    return %c0_i32, %c0_i32_0 : i32, i32
  }
  func.func @transform_11(%arg0: i32, %arg1: i32) -> (i32, i32) {
    %c0_i32 = arith.constant 0 : i32
    %c0_i32_0 = arith.constant 0 : i32
    %c0_i32_1 = arith.constant 0 : i32
    return %c0_i32, %c0_i32_0 : i32, i32
  }
  func.func @transform_12(%arg0: i32, %arg1: i32) -> (i32, i32) {
    %c0_i32 = arith.constant 0 : i32
    %c0_i32_0 = arith.constant 0 : i32
    %c0_i32_1 = arith.constant 0 : i32
    return %c0_i32, %c0_i32_0 : i32, i32
  }
  func.func @transform_13(%arg0: i32, %arg1: i32) -> (i32, i32, i32) {
    %c0_i32 = arith.constant 0 : i32
    %c0_i32_0 = arith.constant 0 : i32
    return %arg0, %arg1, %c0_i32 : i32, i32, i32
  }
}

</mosaic_0001>

<bundles_post_ra>
// kernel: tpu_custom_call.1
= control target key start
LH: loop header
LB: loop body
LE: loop exit
PB: predicated region body
PF: predicated region fallthrough
CT: control target
= control target key end

     0   :  { %s2817_s0 = inlined_call_operand.vmem [shape: bf16[2,16,27], index: 0, kind: input, shape index: {}]   ;;  %s2818_s1 = inlined_call_operand.hbm [shape: bf16[2,8,32], index: 1, kind: input, shape index: {}]   ;;  %s2819_s2 = inlined_call_operand.vmem [shape: f32[14,32], index: 2, kind: input, shape index: {}]   ;;  %s2820_s3 = inlined_call_operand.vmem [shape: bf16[27,32], index: 3, kind: input, shape index: {}]   ;;  %s2821_s4 = inlined_call_operand.vmem [shape: bf16[32,32], index: 4, kind: input, shape index: {}]   ;;  %s2822_s5 = inlined_call_operand.vmem [shape: bf16[32,32], index: 5, kind: input, shape index: {}]   ;;  %s2823_s6 = inlined_call_operand.hbm [shape: bf16[32,32], index: 6, kind: input, shape index: {}]   ;;  %s2824_s7 = inlined_call_operand.hbm [shape: bf16[32,32], index: 7, kind: input, shape index: {}]   ;;  %s2825_s8 = inlined_call_operand.hbm [shape: bf16[32,128], index: 8, kind: input, shape index: {}]   ;;  %s2826_s9 = inlined_call_operand.vmem [shape: f32[1,128], index: 9, kind: input, shape index: {}]   ;;  %s2827_s10 = inlined_call_operand.vmem [shape: bf16[128,32], index: 10, kind: input, shape index: {}]   ;;  %s2828_s11 = inlined_call_operand.hbm [shape: bf16[32,128], index: 11, kind: input, shape index: {}]   ;;  %s2829_s12 = inlined_call_operand.vmem [shape: f32[1,128], index: 12, kind: input, shape index: {}]   ;;  %s2830_s13 = inlined_call_operand.hbm [shape: f32[2,16,128], index: 13, kind: output, shape index: {}]  }
   0x1   :  { %2836 = sst [smem:[#allocation20_spill]] %s2823_s6 }
   0x2   :  { %2837 = sst [smem:[#allocation21_spill]] %s2824_s7 }
   0x3   :  { %2838 = sst [smem:[#allocation22_spill]] %s2825_s8 }
   0x4   :  { %2839 = sst [smem:[#allocation23_spill]] %s2827_s10 }
   0x5   :  { %2840 = sst [smem:[#allocation24_spill]] %s2828_s11 }
   0x6   :  { %2841 = sst [smem:[#allocation25_spill]] %s2829_s12 }
   0x7   :  { %2842 = sst [smem:[#allocation26_spill]] %s2830_s13 }
   0x8   :  { %18 = vsyncpa [#allocation6], 0 }
   0x9   :  { %20 = vsyncpa [#allocation6 + $0x1], 0 }
   0xa   :  { %21 = vsyncpa [#allocation9], 0 }
   0xb   :  { %22 = vsyncpa [#allocation12], 0 }
   0xc   :  { %23 = vsyncpa [#allocation7], 0 }
   0xd   :  { %25 = vsyncpa [#allocation7 + $0x1], 0  ;;  %s2412_s25 = smov 0   ;;  %s2414_s26 = smov 0  }
   0xe   :  { %s2416_s27 = smov 0   ;;  %s2418_s28 = smov 0  }
   0xf   :  { %s2420_s29 = smov 0   ;;  %s2422_s30 = smov 0  }
  0x10 LB: > { %s2831_s14 = sadd.s32 4294967295, %s2325_s30   ;;  %p1742_p0 = scmp.ge.s32.totalorder %s2325_s30, 1  ;;  %s2325_s30 = sphi %s2422_s30, %s31_s30   ;;  %s2321_s29 = sphi %s2420_s29, %s2864_s29   ;;  %s2317_s28 = sphi %s2418_s28, %s2863_s28   ;;  %s2313_s27 = sphi %s2416_s27, %s2862_s27   ;;  %s2309_s26 = sphi %s2414_s26, %s2861_s26   ;;  %s2305_s25 = sphi %s2412_s25, %s2860_s25  }
  0x11   : > { %p2446_p1 = scmp.eq.s32.totalorder %s2831_s14, 0  ;;  %p361_p2 = scmp.lt.s32.totalorder %s2325_s30, 3 }
  0x12   : > { %s2844_s6 = sld [smem:[#allocation20_spill]]  ;;  %s2327_s20 = smov [#allocation8]  }
  0x13   : > { %p2454_p3 = pnand %p1742_p0, %p361_p2  ;;  %s386_s21 = sshll.u32 %s2327_s20, 4  ;;  %s387_s21 = int_to_ptr.vmem [resolvable:$true] %s386_s21 }
  0x14   : > { %p1747_p6 = scmp.ge.s32.totalorder %s2325_s30, 2  ;;  %s2847_s8 = sld [smem:[#allocation22_spill]] }
  0x15   : > { %p1923_p4 = pneg %p2454_p3  ;;  %s2328_s17 = smov 64  }
  0x16   : > { %s2329_s14 = smov 4   ;;  %s2330_s20 = smov [#allocation11]  }
  0x17   : > { %p2462_p5 = pnand %p1923_p4, %p2446_p1  ;;  %s2848_s7 = sld [smem:[#allocation21_spill]] }
  0x18   : > { %s384_s18 = sshll.u32 %s2844_s6, 4  ;;  %s414_s6 = sshll.u32 %s2330_s20, 4  ;;  %s385_s18 = int_to_ptr.hbm [resolvable:$true] %s384_s18  ;;  %s415_s6 = int_to_ptr.vmem [resolvable:$true] %s414_s6 }
  0x19   : > { %1926 = dma.hbm_to_vmem [thread:$0]  (!%p2462_p5), %s385_s18, 256, %s387_s21, [#allocation9], %s2328_s17, %s2328_s17, %s2329_s14  }
  0x1a   : > { %s412_s16 = sshll.u32 %s2847_s8, 4  ;;  %s2849_s11 = sld [smem:[#allocation24_spill]]  ;;  %s413_s16 = int_to_ptr.hbm [resolvable:$true] %s412_s16 }
  0x1b   : > { %1932 = dma.hbm_to_vmem [thread:$0]  (!%p2462_p5), %s413_s16, 256, %s415_s6, [#allocation12], %s2328_s17, %s2328_s17, %s2329_s14  }
  0x1c   : > { %s2331_s21 = smov [#allocation10]   ;;  %s2332_s12 = smov [#allocation13]  }
  0x1d   : > { %s398_s10 = sshll.u32 %s2848_s7, 4  ;;  %s400_s20 = sshll.u32 %s2331_s21, 4  ;;  %s399_s10 = int_to_ptr.hbm [resolvable:$true] %s398_s10  ;;  %s401_s20 = int_to_ptr.vmem [resolvable:$true] %s400_s20 }
  0x1e   : > { %1929 = dma.hbm_to_vmem [thread:$0]  (!%p2462_p5), %s399_s10, 256, %s401_s20, [#allocation9], %s2328_s17, %s2328_s17, %s2329_s14  }
  0x1f   : > { %s434_s13 = sshll.u32 %s2332_s12, 4  ;;  %s43_s6 = sadd.s32 1, %s2321_s29  ;;  %s435_s13 = int_to_ptr.vmem [resolvable:$true] %s434_s13 }
  0x20   : > { %s432_s18 = sshll.u32 %s2849_s11, 4  ;;  %s1741_s16 = sadd.s32 4294967294, %s2325_s30   ;;  %s433_s18 = int_to_ptr.hbm [resolvable:$true] %s432_s18 }
  0x21   : > { %1935 = dma.hbm_to_vmem [thread:$0]  (!%p2462_p5), %s433_s18, 256, %s435_s13, [#allocation12], %s2328_s17, %s2328_s17, %s2329_s14  }
  0x22   : > { %p45_p7 = scmp.ge.s32.totalorder %s43_s6, 2  ;;  %s78_s23 = sadd.s32 1, %s2313_s27 }
  0x23   : > { %p85_p8 = scmp.ne.s32.totalorder %s2313_s27, %s2309_s26  ;;  %p86_p9 = scmp.eq.s32.totalorder %s2325_s30, 0 }
  0x24   : > { %s2866_s6 = smov (%p45_p7, %s43_s6), 0  ;;  %p91_p10 = scmp.ne.s32.totalorder %s2309_s26, %s2305_s25 }
  0x25   : > { %2850 = sst [smem:[#allocation19_spill]] %s2866_s6  ;;  %s75_s10 = ssub.s32 %s2321_s29, %s2866_s6 }
  0x26   : > { %s2851_s24 = sadd.s32 4294967295, %s2325_s30   ;;  %p76_p12 = scmp.eq.s32.totalorder %s75_s10, 0 }
  0x27   : > { %p348_p11 = scmp.eq.s32.totalorder %s2851_s24, 1  ;;  %p2500_p13 = por %p2446_p1, %p91_p10 }
  0x28   : > { %p354_p2 = scmp.eq.s32.totalorder %s1741_s16, 1  ;;  %p87_p4 = por %p86_p9, %p85_p8 }
  0x29   : > { %p2504_p0 = por %p348_p11, %p85_p8  ;;  %s464_s21 = sand.u32 1, %s2313_s27  }
  0x2a   : > { %s2509_s17 = scalar_select %p76_p12, %s2313_s27, %s78_s23  }
  0x2b   : > { %p2511_p5 = por %p354_p2, %p91_p10  ;;  %s1749_s20 = sshll.u32 %s2321_s29, 2 }
  0x2c   : > { %p1948_p7 = scmp.lt.s32.totalorder %s2325_s30, 2  ;;  %s1748_s12 = sshll.u32 %s464_s21, 2 }
  0x2d   : > { %s472_s24 = scalar_lea.hbm %s2818_s1, %s1749_s20  ;;  %s468_s8 = scalar_lea.vmem [#allocation5], %s1748_s12 }
  0x2e   : > { %s474_s7 = sshll.u32 %s472_s24, 4  ;;  %s476_s11 = sshll.u32 %s468_s8, 4  ;;  %s475_s7 = int_to_ptr.hbm [resolvable:$true] %s474_s7  ;;  %s477_s11 = int_to_ptr.vmem [resolvable:$true] %s476_s11 }
  0x2f   : > { %p1937_p11 = pnand %p1948_p7, %p87_p4  ;;  %s465_s16 = scalar_lea.sflag [#allocation6], %s464_s21 }
  0x30   : > { %485 = sbr.rel (%p2454_p3) target bundleno = 2590 (0xa1e), region = 72  ;;  %s2524_s23 = sand.u32 (!%p2454_p3), 1, %s2309_s26  }
  0x31   : > { %1939 = dma.hbm_to_vmem [thread:$0]  (!%p1937_p11), %s475_s7, 64, %s477_s11, %s465_s16  }
  0x32   : > { %s1751_s6 = sshll.u32 (!%p2454_p3), %s2524_s23, 2  ;;  %s488_s13 = scalar_lea.sflag (!%p2454_p3), [#allocation6], %s2524_s23 }
  0x33   : > { %s491_s20 = scalar_lea.vmem (!%p2454_p3), [#allocation5], %s1751_s6 }
  0x35   : > { %2288 = dma.done.wait (%p2500_p13), %s488_s13, 64  }
  0x36   : > { %2290 = vsyncadd (%p2500_p13), %s488_s13, 4294967232 }
  0x37   : > { %2292 = dma.done.wait (%p2446_p1), [#allocation9], 512  }
  0x38   : > { %2294 = vsyncadd (%p2446_p1), [#allocation9], 4294966784 }
  0x39   : > { %2296 = dma.done.wait (%p2446_p1), [#allocation12], 512  }
  0x3a   : > { %2298 = vsyncadd (%p2446_p1), [#allocation12], 4294966784  ;;  %vm717_vm0 = vcmask 1044480   ;;  %p565_p3 = scmp.lt.s32.totalorder %s2317_s28, 1  ;;  %vm718_vm1 = vcmask 1045504   ;;  %v2333_v0 = vmov 65535  }
  0x3b   : > { %v719_v1 = vsel %vm717_vm0, 4294967295, %v2333_v0  ;;  %v1787_v2 = vld [vmem:[%s2820_s3 + $0x8] sm:$0xf]  ;;  %v1884_v3 = vld [vmem:[%s2820_s3 + $0x8] sm:$0x30]  ;;  %vm584_vm2 = vcmask 261120  }
  0x3c   : > { %s566_s7 = scalar_select %p565_p3, %s2317_s28, 1  ;;  %v720_v4 = vsel %vm718_vm1, %v719_v1, 0  ;;  %v1788_v5 = vor.u32 %v1884_v3, %v1787_v2  ;;  %v580_v6 = vld [vmem:[%s491_s20] sm:$0xf]  ;;  %v1883_v9 = vld [vmem:[%s2820_s3] sm:$0xff]  ;;  %vm713_vm3 = vcmask 220160  }
  0x3d   : > { %v581_v7 = vunpack.c.l.bf16 %v580_v6  ;;  %v2334_v12 = vmov 32.0   ;;  %v2017_v17 = vld [vmem:[%s2819_s2 + $0x8] ss:$0 sm:$0xff]  ;;  %v1881_v36 = vld [vmem:[#allocation8 + $0x8] sm:$0xff]  ;;  %v1880_v41 = vld [vmem:[#allocation8] sm:$0xff]  ;;  %vm685_vm14 = vcmask 257024  }
  0x3e   : > { %s1877_s15 = sshll.u32 %s566_s7, 3  ;;  %v722_v8 = vand.u32 %v1788_v5, %v720_v4  ;;  %2033 = vrcp.f32 %v2334_v12  ;;  %v1879_v35 = vld [vmem:[%s2822_s5 + $0x8] sm:$0xff]  ;;  %v1878_v39 = vld [vmem:[%s2822_s5] sm:$0xff]  ;;  %677 = vmatpush.bf16.msra.mxu1 %v1881_v36  ;;  %vm843_vm15 = vcmask 64512   ;;  %vm890_vm0 = vcmask 1043456   ;;  %s2336_s14 = smov 104  }
  0x3f   : > { %v585_v10 = vsel %vm584_vm2, %v581_v7, 0.0  ;;  %s572_s24 = scalar_lea.vmem %s2817_s0, %s1877_s15  ;;  %646 = vmatpush.bf16.msra.mxu0 %v1879_v35  ;;  %v2018_v54 = vld [vmem:[%s2819_s2 + $0x2] ss:$0 sm:$0xff]  ;;  %v2019_v57 = vld [vmem:[%s2819_s2 + $0x3] ss:$0 sm:$0xff]  ;;  %v1886_v61 = vld [vmem:[%s2821_s4 + $0x8] sm:$0xff] }
  0x40   : > { %730 = vmatpush.bf16.msra.mxu2 %v722_v8  ;;  %586 = vadd.xlane.f32.xlu0 %v585_v10  ;;  %v1882_v11 = vld [vmem:[%s572_s24] sm:$0xff]  ;;  %s2335_s15 = smov 120   ;;  %s2337_s21 = smov 112   ;;  %vm910_vm1 = vcmask 60416  }
  0x41   : > { %826 = vmatpush.bf16.msra.mxu3 %v1886_v61  ;;  %v1885_v63 = vld [vmem:[%s2821_s4] sm:$0xff]  ;;  %s2835_s24 = smov 8   ;;  %s2339_s16 = smov 16  }
  0x42   : > { %678 = vmatpush.bf16.msra.mxu1 %v1880_v41  ;;  %s2340_s13 = smov 24   ;;  %s2855_s10 = sld [smem:[#allocation23_spill]] }
  0x43   : > { %647 = vmatpush.bf16.msra.mxu0 %v1878_v39  ;;  %s2856_s12 = sld [smem:[#allocation25_spill]] }
  0x44   : > { %731 = vmatpush.bf16.msra.mxu2 %v1883_v9  ;;  %v2034_v13 = vpop.eup %2033  ;;  %s2857_s8 = sld [smem:[#allocation26_spill]] }
  0x45   : > { %v589_v14 = vmul.f32 32.0, %v2034_v13  ;;  %vm593_vm4 = vweird.f32 %v2034_v13  ;;  %827 = vmatpush.bf16.msra.mxu3 %v1885_v63 }
  0x47   : > { %1789 = vmatmul.msk.bf16.vlgmr.msra.gmra.mxu2 %vm713_vm3, %v1882_v11  ;;  %v590_v15 = vsub.f32 1.0, %v589_v14  ;;  %vm1000_vm3 = vcmask 126016  }
  0x49   : > { %v591_v16 = vmul.f32 %v2034_v13, %v590_v15 }
  0x4b   : > { %v592_v18 = vadd.f32 %v2034_v13, %v591_v16 }
  0x4d   : > { %v2560_v21 = vsel %vm593_vm4, %v2034_v13, %v592_v18  ;;  %v2020_v18 = vld [vmem:[%s2819_s2] ss:$0 sm:$0xff]  ;;  %vm1090_vm4 = vcmask 191616  }
  0xb3   : > { %v587_v22 = vpop.xlane.xlu0 %586 }
  0xb4   : > { %v595_v24 = vmul.f32 %v2560_v21, %v587_v22 }
  0xb6   : > { %v596_v27 = vsub.f32 %v581_v7, %v595_v24 }
  0xb8   : > { %v597_v29 = vmul.f32 %v596_v27, %v596_v27 }
  0xba   : > { %v598_v30 = vsel %vm584_vm2, %v597_v29, 0.0 }
  0xca   : > { %v733_v19 = vpop.f32.mrf.mxu2 }
  0xcb   : > { %v2558_v20 = vadd.f32 %v2017_v17, %v733_v19 }
  0xcd   : > { %v741_v23 = vsel %vm584_vm2, %v2558_v20, 0.0 }
  0xce   : > { %742 = vadd.xlane.f32.xlu0 %v741_v23 }
  0xd2   : > { %v735_v25 = vpop.f32.mrf.mxu2 }
  0xd3   : > { %v2565_v26 = vadd.f32 %v2017_v17, %v735_v25  ;;  %v2021_v25 = vld [vmem:[%s2819_s2 + $0x1] ss:$0 sm:$0xff] }
  0xd5   : > { %v744_v28 = vsel %vm584_vm2, %v2565_v26, 0.0 }
  0xd6   : > { %745 = vadd.xlane.f32.xlu1 %v744_v28 }
  0xde   : > { %599 = vadd.xlane.f32.xlu1 %v598_v30 }
 0x141   : > { %v743_v31 = vpop.xlane.xlu0 %742 }
 0x142   : > { %v754_v32 = vmul.f32 %v743_v31, %v2560_v21  ;;  %v2022_v31 = vld [vmem:[%s2819_s2 + $0xa] ss:$0 sm:$0xff] }
 0x144   : > { %v2572_v33 = vsub.f32 %v2558_v20, %v754_v32  ;;  %v2023_v32 = vld [vmem:[%s2819_s2 + $0xb] ss:$0 sm:$0xff] }
 0x146   : > { %v758_v34 = vmul.f32 %v2572_v33, %v2572_v33 }
 0x148   : > { %v760_v37 = vsel %vm584_vm2, %v758_v34, 0.0 }
 0x149   : > { %v746_v38 = vpop.xlane.xlu1 %745  ;;  %761 = vadd.xlane.f32.xlu2 %v760_v37 }
 0x14a   : > { %v755_v40 = vmul.f32 %v746_v38, %v2560_v21 }
 0x14c   : > { %v2585_v42 = vsub.f32 %v2565_v26, %v755_v40 }
 0x14e   : > { %v759_v43 = vmul.f32 %v2585_v42, %v2585_v42 }
 0x150   : > { %v763_v44 = vsel %vm584_vm2, %v759_v43, 0.0 }
 0x151   : > { %v600_v45 = vpop.xlane.xlu1 %599  ;;  %764 = vadd.xlane.f32.xlu2 %v763_v44 }
 0x152   : > { %v601_v46 = vmul.f32 %v600_v45, %v2560_v21 }
 0x154   : > { %v602_v47 = vadd.f32 1e-05, %v601_v46 }
 0x156   : > { %2035 = vrsqrt.f32 %v602_v47  ;;  %vm609_vm5 = vweird.f32 %v602_v47 }
 0x15c   : > { %v2036_v48 = vpop.eup %2035 }
 0x15d   : > { %v604_v49 = vmul.f32 %v2036_v48, %v602_v47  ;;  %vm610_vm6 = vweird.f32 %v2036_v48 }
 0x15e   : > { %vm611_vm7 = vmor %vm609_vm5, %vm610_vm6  ;;  %vm1180_vm5 = vcmask 257216  }
 0x15f   : > { %v605_v50 = vmul.f32 %v2036_v48, %v604_v49 }
 0x161   : > { %v606_v51 = vmul.f32 0.5, %v605_v50 }
 0x163   : > { %v607_v52 = vsub.f32 1.5, %v606_v51 }
 0x165   : > { %v608_v53 = vmul.f32 %v2036_v48, %v607_v52 }
 0x167   : > { %v612_v55 = vsel %vm611_vm7, %v2036_v48, %v608_v53 }
 0x168   : > { %v613_v56 = vmul.f32 %v612_v55, %v596_v27 }
 0x16a   : > { %v615_v58 = vmul.f32 %v2018_v54, %v613_v56 }
 0x16c   : > { %v617_v59 = vadd.f32 %v2019_v57, %v615_v58  ;;  %v2024_v58 = vld [vmem:[%s2819_s2 + $0x9] ss:$0 sm:$0xff] }
 0x16e   : > { %v618_v60 = vpack.c.bf16 %v617_v59, %v617_v59 }
 0x170   : > { %1767 = vmatmul.msk.bf16.vlgmr.msra.gmra.mxu0 %vm584_vm2, %v618_v60  ;;  %1776 = vmatmul.msk.bf16.vlgmr.msra.gmra.mxu1 %vm584_vm2, %v618_v60 }
 0x1bc   : > { %v762_v62 = vpop.xlane.xlu2 %761 }
 0x1bd   : > { %v766_v0 = vmul.f32 %v762_v62, %v2560_v21 }
 0x1bf   : > { %v768_v1 = vadd.f32 1e-05, %v766_v0 }
 0x1c1   : > { %2037 = vrsqrt.f32 %v768_v1  ;;  %vm776_vm9 = vweird.f32 %v768_v1 }
 0x1c4   : > { %v765_v2 = vpop.xlane.xlu2 %764 }
 0x1c5   : > { %v767_v3 = vmul.f32 %v765_v2, %v2560_v21 }
 0x1c7   : > { %v2038_v4 = vpop.eup %2037  ;;  %v769_v5 = vadd.f32 1e-05, %v767_v3 }
 0x1c8   : > { %v771_v6 = vmul.f32 %v2038_v4, %v768_v1  ;;  %vm777_vm8 = vweird.f32 %v2038_v4 }
 0x1c9   : > { %2039 = vrsqrt.f32 %v769_v5  ;;  %vm778_vm10 = vmor %vm776_vm9, %vm777_vm8  ;;  %vm786_vm12 = vweird.f32 %v769_v5 }
 0x1ca   : > { %v772_v7 = vmul.f32 %v2038_v4, %v771_v6 }
 0x1cc   : > { %v773_v8 = vmul.f32 0.5, %v772_v7 }
 0x1ce   : > { %v774_v9 = vsub.f32 1.5, %v773_v8 }
 0x1cf   : > { %v2040_v10 = vpop.eup %2039 }
 0x1d0   : > { %v775_v11 = vmul.f32 %v2038_v4, %v774_v9  ;;  %v781_v12 = vmul.f32 %v2040_v10, %v769_v5  ;;  %vm787_vm11 = vweird.f32 %v2040_v10 }
 0x1d1   : > { %vm788_vm13 = vmor %vm786_vm12, %vm787_vm11 }
 0x1d2   : > { %v782_v13 = vmul.f32 %v2040_v10, %v781_v12  ;;  %v779_v14 = vsel %vm778_vm10, %v2038_v4, %v775_v11 }
 0x1d3   : > { %v790_v17 = vmul.f32 %v779_v14, %v2572_v33 }
 0x1d4   : > { %v783_v15 = vmul.f32 0.5, %v782_v13 }
 0x1d5   : > { %v793_v24 = vmul.f32 %v2020_v18, %v790_v17 }
 0x1d6   : > { %v784_v16 = vsub.f32 1.5, %v783_v15 }
 0x1d7   : > { %v796_v28 = vadd.f32 %v2021_v25, %v793_v24 }
 0x1d8   : > { %v785_v19 = vmul.f32 %v2040_v10, %v784_v16 }
 0x1da   : > { %v789_v22 = vsel %vm788_vm13, %v2040_v10, %v785_v19 }
 0x1db   : > { %v791_v23 = vmul.f32 %v789_v22, %v2585_v42 }
 0x1dd   : > { %v794_v27 = vmul.f32 %v2020_v18, %v791_v23 }
 0x1df   : > { %v797_v29 = vadd.f32 %v2021_v25, %v794_v27 }
 0x1e1   : > { %v798_v30 = vpack.c.bf16 %v797_v29, %v796_v28 }
 0x1e3   : > { %1798 = vmatmul.msk.bf16.vlgmr.msra.gmra.mxu3 %vm584_vm2, %v798_v30 }
 0x1ed   : > { %v649_v33 = vpop.f32.mrf.mxu0  ;;  %v680_v34 = vpop.f32.mrf.mxu1 }
 0x1ee   : > { %v650_v35 = vadd.f32 %v2022_v31, %v649_v33  ;;  %v681_v36 = vadd.f32 %v2023_v32, %v680_v34 }
 0x1f0   : > { %v684_v37 = vpack.c.bf16 %v650_v35, %v650_v35  ;;  %v687_v38 = vpack.c.bf16 %v681_v36, %v681_v36 }
 0x1f2   : > { %686 = vst.msk [vmem:[#allocation2] sm:$0xf] %vm685_vm14, %v684_v37 }
 0x1f3   : > { %688 = vst.msk [vmem:[#allocation3] sm:$0xf] %vm685_vm14, %v687_v38 }
 0x1f5   : > { %v651_v39 = vpop.f32.mrf.mxu0  ;;  %v682_v40 = vpop.f32.mrf.mxu1 }
 0x1f9   : > { %v836_v41 = vld [vmem:[#allocation2] sm:$0xf] }
 0x1fa   : > { %v913_v42 = vld [vmem:[#allocation2] sm:$0xf]  ;;  %v848_v44 = vsel %vm843_vm15, %v836_v41, 0  ;;  %v837_v45 = vld [vmem:[#allocation3] sm:$0xf] }
 0x1fb   : > { %v1093_v43 = vld [vmem:[#allocation2] sm:$0xf]  ;;  %v918_v46 = vunpack.c.l.b16 %v913_v42  ;;  %857 = vmatpush.bf16.xpose.msrb.mxu0 %v848_v44  ;;  %v892_v48 = vsel %vm890_vm0, %v837_v45, 0  ;;  %v914_v27 = vld [vmem:[#allocation3] sm:$0xf] }
 0x1fc   : > { %v1098_v47 = vunpack.c.l.b16 %v1093_v43  ;;  %901 = vmatpush.bf16.msrb.mxu1 %v892_v48  ;;  %v1003_v51 = vld [vmem:[#allocation2] sm:$0xf]  ;;  %v966_v30 = vunpack.c.l.b16 %v914_v27 }
 0x1fd   : > { %v919_v49 = vpack.c.b16 %v918_v46, %v918_v46  ;;  %v1008_v52 = vunpack.c.l.b16 %v1003_v51 }
 0x1fe   : > { %v1099_v50 = vpack.c.b16 %v1098_v47, %v1098_v47  ;;  %v967_v33 = vpack.c.b16 %v966_v30, %v966_v30 }
 0x1ff   : > { %920 = vrot.lane.b32.xlu0 %v919_v49, %s2335_s15  ;;  %v1009_v53 = vpack.c.b16 %v1008_v52, %v1008_v52 }
 0x200   : > { %1100 = vrot.lane.b32.xlu2 %v1099_v50, %s2336_s14 }
 0x208   : > { %1010 = vrot.lane.b32.xlu2 %v1009_v53, %s2337_s21 }
 0x25a   : > { %v1101_v54 = vpop.permute.xlu2 %1100 }
 0x25b   : > { %v1106_v2 = vsel %vm843_vm15, %v1101_v54, 0 }
 0x262   : > { %v1011_v55 = vpop.permute.xlu2 %1010 }
 0x263   : > { %v1016_v56 = vsel %vm843_vm15, %v1011_v55, 0 }
 0x264   : > { %1025 = vmatpush.bf16.xpose.msra.mxu0 %v1016_v56 }
 0x266   : > { %v829_v57 = vpop.f32.mrf.mxu3 }
 0x267   : > { %v830_v59 = vadd.f32 %v2024_v58, %v829_v57 }
 0x269   : > { %v834_v61 = vpack.c.bf16 %v830_v59, %v830_v59 }
 0x26b   : > { %v840_v3 = vunpack.c.l.b16 %v834_v61 }
 0x26e   : > { %v831_v60 = vpop.f32.mrf.mxu3 }
 0x26f   : > { %v832_v62 = vadd.f32 %v2024_v58, %v831_v60 }
 0x271   : > { %v921_v63 = vpop.permute.xlu0 %920  ;;  %v835_v0 = vpack.c.bf16 %v832_v62, %v832_v62 }
 0x272   : > { %v926_v1 = vsel %vm843_vm15, %v921_v63, 0 }
 0x273   : > { %935 = vmatpush.bf16.xpose.msrb.mxu2 %v926_v1  ;;  %v841_v4 = vunpack.c.l.b16 %v835_v0 }
 0x275   : > { %v842_v5 = vpack.c.b16 %v841_v4, %v840_v3 }
 0x277   : > { %1095 = vrot.lane.b32.xlu0 %v842_v5, %s2336_s14  ;;  %915 = vrot.lane.b32.xlu1 %v842_v5, %s2335_s15 }
 0x278   : > { %1799 = vmatmul.msk.bf16.vlgmr.msrb.gmra.mxu0 %vm843_vm15, %v842_v5 }
 0x27b   : > { %1115 = vmatpush.bf16.xpose.msra.mxu2 %v1106_v2 }
 0x27f   : > { %1005 = vrot.lane.b32.xlu1 %v842_v5, %s2337_s21  ;;  %v1004_v5 = vld [vmem:[#allocation3] sm:$0xf] }
 0x2e9   : > { %v916_v6 = vpop.permute.xlu1 %915  ;;  %v1096_v10 = vpop.permute.xlu0 %1095 }
 0x2ea   : > { %1801 = vmatmul.msk.bf16.vlgmr.msrb.gmra.mxu2 %vm843_vm15, %v916_v6  ;;  %v1056_v6 = vunpack.c.l.b16 %v1004_v5 }
 0x2f1   : > { %v1006_v7 = vpop.permute.xlu1 %1005 }
 0x2f2   : > { %1803 = vmatmul.msk.bf16.vlgmr.msra.gmra.mxu0 %vm843_vm15, %v1006_v7 }
 0x2f5   : > { %v859_v8 = vpop.f32.mrf.mxu0 }
 0x2f6   : > { %v864_v9 = vsel %vm843_vm15, %v859_v8, -inf }
 0x2f7   : > { %865 = vmax.xlane.f32.xlu1 %v864_v9  ;;  %v1057_v9 = vpack.c.b16 %v1056_v6, %v1056_v6 }
 0x2fa   : > { %1805 = vmatmul.msk.bf16.vlgmr.msra.gmra.mxu2 %vm843_vm15, %v1096_v10 }
 0x2fd   : > { %v861_v11 = vpop.f32.mrf.mxu0 }
 0x2fe   : > { %v867_v12 = vsel %vm843_vm15, %v861_v11, -inf }
 0x2ff   : > { %868 = vmax.xlane.f32.xlu0 %v867_v12  ;;  %v1094_v12 = vld [vmem:[#allocation3] sm:$0xf] }
 0x36a   : > { %v866_v19 = vpop.xlane.xlu1 %865 }
 0x36b   : > { %v870_v22 = vsub.f32 %v859_v8, %v866_v19 }
 0x36d   : > { %v937_v13 = vpop.f32.mrf.mxu2  ;;  %v872_v25 = vmul.f32 1.442695, %v870_v22 }
 0x36e   : > { %v942_v14 = vsel %vm843_vm15, %v937_v13, -inf }
 0x36f   : > { %943 = vmax.xlane.f32.xlu0 %v942_v14  ;;  %v1027_v15 = vpop.f32.mrf.mxu0  ;;  %2041 = vpow2.f32 %v872_v25 }
 0x370   : > { %v1032_v17 = vsel %vm843_vm15, %v1027_v15, -inf }
 0x372   : > { %v869_v36 = vpop.xlane.xlu0 %868 }
 0x373   : > { %v871_v39 = vsub.f32 %v861_v11, %v869_v36 }
 0x375   : > { %v939_v16 = vpop.f32.mrf.mxu2  ;;  %v2648_v34 = vpop.eup %2041  ;;  %v874_v41 = vmul.f32 1.442695, %v871_v39 }
 0x376   : > { %v945_v18 = vsel %vm843_vm15, %v939_v16, -inf  ;;  %v876_v35 = vsel %vm843_vm15, %v2648_v34, 0.0 }
 0x377   : > { %1033 = vmax.xlane.f32.xlu0 %v1032_v17  ;;  %946 = vmax.xlane.f32.xlu2 %v945_v18  ;;  %v1029_v28 = vpop.f32.mrf.mxu0 }
 0x378   : > { %v1035_v31 = vsel %vm843_vm15, %v1029_v28, -inf }
 0x37d   : > { %v1117_v23 = vpop.f32.mrf.mxu2 }
 0x37e   : > { %v1122_v24 = vsel %vm843_vm15, %v1117_v23, -inf }
 0x37f   : > { %1123 = vmax.xlane.f32.xlu2 %v1122_v24 }
 0x385   : > { %v1119_v29 = vpop.f32.mrf.mxu2 }
 0x386   : > { %v1125_v32 = vsel %vm843_vm15, %v1119_v29, -inf }
 0x387   : > { %1036 = vmax.xlane.f32.xlu2 %v1035_v31  ;;  %1126 = vmax.xlane.f32.xlu1 %v1125_v32 }
 0x38b   : > { %968 = vrot.lane.b32.xlu0 %v967_v33, %s2335_s15  ;;  %s1756_s15 = sshll.u32 %s2524_s23, 4 }
 0x38f   : > { %877 = vadd.xlane.f32.xlu2 %v876_v35 }
 0x3e2   : > { %v944_v37 = vpop.xlane.xlu0 %943 }
 0x3e3   : > { %v948_v38 = vsub.f32 %v937_v13, %v944_v37  ;;  %v1146_v13 = vunpack.c.l.b16 %v1094_v12 }
 0x3e5   : > { %v950_v40 = vmul.f32 1.442695, %v948_v38  ;;  %v1147_v14 = vpack.c.b16 %v1146_v13, %v1146_v13 }
 0x3e7   : > { %2043 = vpow2.f32 %v950_v40 }
 0x3e8   : > { %2045 = vpow2.f32 %v874_v41 }
 0x3ea   : > { %v947_v42 = vpop.xlane.xlu2 %946  ;;  %v1034_v43 = vpop.xlane.xlu0 %1033 }
 0x3eb   : > { %v949_v44 = vsub.f32 %v939_v16, %v947_v42  ;;  %v1038_v45 = vsub.f32 %v1027_v15, %v1034_v43 }
 0x3ed   : > { %v2653_v46 = vpop.eup %2043  ;;  %v952_v47 = vmul.f32 1.442695, %v949_v44  ;;  %v1040_v48 = vmul.f32 1.442695, %v1038_v45 }
 0x3ee   : > { %v954_v49 = vsel %vm843_vm15, %v2653_v46, 0.0  ;;  %v2046_v51 = vpop.eup %2045 }
 0x3ef   : > { %2047 = vpow2.f32 %v952_v47  ;;  %955 = vadd.xlane.f32.xlu1 %v954_v49  ;;  %v879_v57 = vsel %vm843_vm15, %v2046_v51, 0.0 }
 0x3f0   : > { %2049 = vpow2.f32 %v1040_v48 }
 0x3f2   : > { %v1124_v50 = vpop.xlane.xlu2 %1123 }
 0x3f3   : > { %v1128_v52 = vsub.f32 %v1117_v23, %v1124_v50 }
 0x3f5   : > { %v2048_v53 = vpop.eup %2047  ;;  %v1130_v54 = vmul.f32 1.442695, %v1128_v52 }
 0x3f6   : > { %v2657_v55 = vpop.eup %2049  ;;  %v957_v56 = vsel %vm843_vm15, %v2048_v53, 0.0 }
 0x3f7   : > { %2051 = vpow2.f32 %v1130_v54  ;;  %958 = vadd.xlane.f32.xlu0 %v957_v56  ;;  %880 = vadd.xlane.f32.xlu1 %v879_v57  ;;  %v1044_v58 = vsel %vm843_vm15, %v2657_v55, 0.0 }
 0x3f8   : > { %1045 = vadd.xlane.f32.xlu2 %v1044_v58 }
 0x3fa   : > { %v1127_v59 = vpop.xlane.xlu1 %1126  ;;  %v1037_v60 = vpop.xlane.xlu2 %1036 }
 0x3fb   : > { %v1129_v61 = vsub.f32 %v1119_v29, %v1127_v59  ;;  %v1039_v1 = vsub.f32 %v1029_v28, %v1037_v60 }
 0x3fd   : > { %v2052_v62 = vpop.eup %2051  ;;  %v1132_v63 = vmul.f32 1.442695, %v1129_v61  ;;  %v969_v0 = vpop.permute.xlu0 %968  ;;  %v1042_v4 = vmul.f32 1.442695, %v1039_v1 }
 0x3fe   : > { %v1134_v2 = vsel %vm843_vm15, %v2052_v62, 0.0  ;;  %v974_v3 = vsel %vm890_vm0, %v969_v0, 0 }
 0x3ff   : > { %983 = vmatpush.bf16.msrb.mxu3 %v974_v3  ;;  %2053 = vpow2.f32 %v1132_v63 }
 0x400   : > { %1135 = vadd.xlane.f32.xlu2 %v1134_v2  ;;  %2055 = vpow2.f32 %v1042_v4  ;;  %v1889_v2 = vld [vmem:[#allocation10 + $0x8] sm:$0xff]  ;;  %v1888_v4 = vld [vmem:[#allocation10] sm:$0xff] }
 0x401   : > { %1217 = vmatpush.bf16.msrb.mxu0 %v1889_v2 }
 0x402   : > { %v878_v16 = vpop.xlane.xlu2 %877 }
 0x403   : > { %2057 = vrcp.f32 %v878_v16 }
 0x405   : > { %v2054_v7 = vpop.eup %2053  ;;  %1218 = vmatpush.bf16.msrb.mxu0 %v1888_v4  ;;  %v1898_v4 = vld [vmem:[%s2855_s10 + $0x30] sm:$0xff] }
 0x406   : > { %v1137_v8 = vsel %vm843_vm15, %v2054_v7, 0.0  ;;  %v2056_v10 = vpop.eup %2055 }
 0x407   : > { %1138 = vadd.xlane.f32.xlu1 %v1137_v8  ;;  %v1047_v11 = vsel %vm843_vm15, %v2056_v10, 0.0 }
 0x409   : > { %v2058_v22 = vpop.eup %2057 }
 0x40a   : > { %v884_v25 = vmul.f32 %v2058_v22, %v2648_v34 }
 0x40b   : > { %1058 = vrot.lane.b32.xlu0 %v1057_v9, %s2337_s21 }
 0x40f   : > { %1048 = vadd.xlane.f32.xlu1 %v1047_v11  ;;  %v2025_v11 = vld [vmem:[%s2819_s2 + $0xc] ss:$0 sm:$0xff] }
 0x418   : > { %1148 = vrot.lane.b32.xlu2 %v1147_v14, %s2336_s14 }
 0x462   : > { %v956_v15 = vpop.xlane.xlu1 %955 }
 0x463   : > { %2059 = vrcp.f32 %v956_v15 }
 0x469   : > { %v2060_v23 = vpop.eup %2059 }
 0x46a   : > { %v881_v17 = vpop.xlane.xlu1 %880  ;;  %v959_v18 = vpop.xlane.xlu0 %958  ;;  %v962_v30 = vmul.f32 %v2060_v23, %v2653_v46 }
 0x46b   : > { %2061 = vrcp.f32 %v881_v17  ;;  %v1046_v19 = vpop.xlane.xlu2 %1045 }
 0x46c   : > { %2063 = vrcp.f32 %v959_v18 }
 0x471   : > { %v2062_v24 = vpop.eup %2061 }
 0x472   : > { %v885_v27 = vmul.f32 %v2062_v24, %v2046_v51  ;;  %v2064_v28 = vpop.eup %2063 }
 0x473   : > { %v1136_v29 = vpop.xlane.xlu2 %1135  ;;  %v963_v31 = vmul.f32 %v2064_v28, %v2048_v53 }
 0x474   : > { %v886_v32 = vpack.c.bf16 %v885_v27, %v884_v25  ;;  %2065 = vrcp.f32 %v1136_v29 }
 0x475   : > { %v964_v33 = vpack.c.bf16 %v963_v31, %v962_v30 }
 0x476   : > { %1800 = vmatmul.msk.bf16.vlgmr.msrb.gmra.mxu1 %vm843_vm15, %v886_v32  ;;  %v1891_v32 = vld [vmem:[#allocation11 + $0x8] sm:$0xff] }
 0x477   : > { %1802 = vmatmul.msk.bf16.vlgmr.msrb.gmra.mxu3 %vm843_vm15, %v964_v33 }
 0x47a   : > { %v1139_v35 = vpop.xlane.xlu1 %1138  ;;  %v2066_v39 = vpop.eup %2065 }
 0x47b   : > { %v1149_v36 = vpop.permute.xlu2 %1148  ;;  %2067 = vrcp.f32 %v1139_v35  ;;  %v1142_v41 = vmul.f32 %v2066_v39, %v2052_v62 }
 0x47c   : > { %v1154_v37 = vsel %vm890_vm0, %v1149_v36, 0  ;;  %2069 = vrcp.f32 %v1046_v19  ;;  %v1890_v36 = vld [vmem:[#allocation11] sm:$0xff] }
 0x47d   : > { %1163 = vmatpush.bf16.msra.mxu3 %v1154_v37  ;;  %v1059_v34 = vpop.permute.xlu0 %1058 }
 0x47e   : > { %v1064_v38 = vsel %vm890_vm0, %v1059_v34, 0 }
 0x47f   : > { %1073 = vmatpush.bf16.msra.mxu1 %v1064_v38 }
 0x481   : > { %v2068_v40 = vpop.eup %2067 }
 0x482   : > { %v1143_v42 = vmul.f32 %v2068_v40, %v2054_v7  ;;  %v1049_v43 = vpop.xlane.xlu1 %1048  ;;  %v2070_v45 = vpop.eup %2069 }
 0x483   : > { %2071 = vrcp.f32 %v1049_v43  ;;  %v1052_v47 = vmul.f32 %v2070_v45, %v2657_v55  ;;  %1309 = vmatpush.bf16.msrb.mxu1 %v1891_v32  ;;  %v1894_v32 = vld [vmem:[%s2855_s10 + $0x10] sm:$0xff] }
 0x484   : > { %v1144_v44 = vpack.c.bf16 %v1143_v42, %v1142_v41 }
 0x487   : > { %1806 = vmatmul.msk.bf16.vlgmr.msra.gmra.mxu3 %vm843_vm15, %v1144_v44  ;;  %1310 = vmatpush.bf16.msrb.mxu1 %v1890_v36 }
 0x489   : > { %v2072_v46 = vpop.eup %2071 }
 0x48a   : > { %v1053_v48 = vmul.f32 %v2072_v46, %v2056_v10 }
 0x48c   : > { %v1054_v49 = vpack.c.bf16 %v1053_v48, %v1052_v47 }
 0x48e   : > { %1804 = vmatmul.msk.bf16.vlgmr.msra.gmra.mxu1 %vm843_vm15, %v1054_v49 }
 0x4f3   : > { %v903_v50 = vpop.f32.mrf.mxu1 }
 0x4f4   : > { %v908_v51 = vpack.c.bf16 %v903_v50, %v903_v50 }
 0x4f6   : > { %911 = vst.msk [vmem:[#allocation4] sm:$0xf] %vm910_vm1, %v908_v51  ;;  %v2026_v51 = vld [vmem:[%s2819_s2 + $0x4] ss:$0 sm:$0xff] }
 0x4fa   : > { %v985_v52 = vpop.f32.mrf.mxu3 }
 0x4fb   : > { %v905_v53 = vpop.f32.mrf.mxu1  ;;  %v990_v54 = vpack.c.bf16 %v985_v52, %v985_v52 }
 0x4fc   : > { %v909_v56 = vpack.c.bf16 %v905_v53, %v905_v53 }
 0x4fd   : > { %994 = vrot.lane.b32.xlu1 %v990_v54, %s2835_s24 }
 0x4fe   : > { %912 = vst.msk [vmem:[#allocation4 + $0x4] sm:$0xf] %vm910_vm1, %v909_v56  ;;  %v2027_v56 = vld [vmem:[%s2819_s2 + $0x5] ss:$0 sm:$0xff] }
 0x502   : > { %v987_v57 = vpop.f32.mrf.mxu3 }
 0x503   : > { %v991_v63 = vpack.c.bf16 %v987_v57, %v987_v57 }
 0x50a   : > { %v1165_v58 = vpop.f32.mrf.mxu3 }
 0x50b   : > { %v1075_v59 = vpop.f32.mrf.mxu1  ;;  %v1170_v1 = vpack.c.bf16 %v1165_v58, %v1165_v58 }
 0x50c   : > { %v1080_v55 = vpack.c.bf16 %v1075_v59, %v1075_v59 }
 0x50e   : > { %1084 = vrot.lane.b32.xlu0 %v1080_v55, %s2339_s16 }
 0x512   : > { %v1167_v60 = vpop.f32.mrf.mxu3 }
 0x513   : > { %v1171_v61 = vpack.c.bf16 %v1167_v60, %v1167_v60  ;;  %v1077_v62 = vpop.f32.mrf.mxu1 }
 0x514   : > { %v1081_v0 = vpack.c.bf16 %v1077_v62, %v1077_v62  ;;  %v2028_v62 = vld [vmem:[%s2826_s9] ss:$0 sm:$0xff] }
 0x515   : > { %1176 = vrot.lane.b32.xlu1 %v1171_v61, %s2340_s13 }
 0x516   : > { %996 = vrot.lane.b32.xlu0 %v991_v63, %s2835_s24  ;;  %1086 = vrot.lane.b32.xlu2 %v1081_v0, %s2339_s16  ;;  %s1902_s16 = sshll.u32 %s2317_s28, 4  ;;  %s1583_s24 = scalar_lea.sflag [#allocation7], %s2524_s23 }
 0x517   : > { %s1596_s11 = scalar_lea.hbm %s2857_s8, %s1902_s16 }
 0x518   : > { %s1599_s6 = sshll.u32 %s1596_s11, 4  ;;  %s1600_s6 = int_to_ptr.hbm [resolvable:$true] %s1599_s6 }
 0x519   : > { %s2249_s14 = sshra.s32 %s1600_s6, 4  ;;  %s2250_s14 = int_to_ptr.hbm [resolvable:$true] %s2249_s14 }
 0x51a   : > { %s2251_s21 = scalar_lea.hbm %s2250_s14, 16  ;;  %p2256_p10 = scmp.lt.s32.totalorder %s2250_s14, %s2857_s8 }
 0x51b   : > { %p2252_p1 = scmp.ne.s32.totalorder %s2250_s14, %s2251_s21 }
 0x51d   : > { %p2253_p8 = pnand %p2252_p1, %p2504_p0 }
 0x51e   : > { %1174 = vrot.lane.b32.xlu0 %v1170_v1, %s2340_s13  ;;  %v1899_v1 = vld [vmem:[%s2855_s10 + $0x38] sm:$0xff]  ;;  %s563_s13 = scalar_lea.vmem [#allocation14], %s1756_s15 }
 0x51f   : > { %1470 = vmatpush.bf16.msrb.mxu2 %v1899_v1  ;;  %s1597_s19 = sshll.u32 %s563_s13, 4  ;;  %p2254_p9 = pneg %p2253_p8  ;;  %s1598_s19 = int_to_ptr.vmem [resolvable:$true] %s1597_s19 }
 0x523   : > { %1471 = vmatpush.bf16.msrb.mxu2 %v1898_v4 }
 0x56f   : > { %v995_v3 = vpop.permute.xlu1 %994 }
 0x570   : > { %1001 = vst.msk [vmem:[#allocation4] sm:$0xf] %vm1000_vm3, %v995_v3  ;;  %v1087_v7 = vpop.permute.xlu2 %1086 }
 0x580   : > { %v1085_v5 = vpop.permute.xlu0 %1084 }
 0x581   : > { %1091 = vst.msk [vmem:[#allocation4] sm:$0xf] %vm1090_vm4, %v1085_v5 }
 0x587   : > { %v1177_v8 = vpop.permute.xlu1 %1176 }
 0x588   : > { %v997_v6 = vpop.permute.xlu0 %996 }
 0x589   : > { %1002 = vst.msk [vmem:[#allocation4 + $0x4] sm:$0xf] %vm1000_vm3, %v997_v6 }
 0x58a   : > { %1092 = vst.msk [vmem:[#allocation4 + $0x4] sm:$0xf] %vm1090_vm4, %v1087_v7 }
 0x58b   : > { %1182 = vst.msk [vmem:[#allocation4 + $0x4] sm:$0xf] %vm1180_vm5, %v1177_v8 }
 0x590   : > { %v1175_v9 = vpop.permute.xlu0 %1174 }
 0x591   : > { %1181 = vst.msk [vmem:[#allocation4] sm:$0xf] %vm1180_vm5, %v1175_v9 }
 0x598   : > { %v1887_v10 = vld [vmem:[#allocation4] sm:$0xff] }
 0x599   : > { %1819 = vmatmul.msk.bf16.vlgmr.msrb.gmra.mxu0 %vm584_vm2, %v1887_v10  ;;  %v1897_v10 = vld [vmem:[%s2855_s10 + $0x28] sm:$0xff] }
 0x59a   : > { %1472 = vmatpush.bf16.msrb.mxu2 %v1897_v10 }
 0x616   : > { %v1220_v12 = vpop.f32.mrf.mxu0 }
 0x617   : > { %v1221_v13 = vadd.f32 %v2025_v11, %v1220_v12 }
 0x619   : > { %v2685_v14 = vadd.f32 %v1221_v13, %v2558_v20 }
 0x61b   : > { %v1229_v15 = vsel %vm584_vm2, %v2685_v14, 0.0 }
 0x61c   : > { %1230 = vadd.xlane.f32.xlu2 %v1229_v15 }
 0x61e   : > { %v1222_v16 = vpop.f32.mrf.mxu0 }
 0x61f   : > { %v1223_v17 = vadd.f32 %v2025_v11, %v1222_v16  ;;  %v1896_v16 = vld [vmem:[%s2855_s10 + $0x20] sm:$0xff] }
 0x620   : > { %1473 = vmatpush.bf16.msrb.mxu2 %v1896_v16 }
 0x621   : > { %v2690_v18 = vadd.f32 %v1223_v17, %v2565_v26 }
 0x623   : > { %v1232_v19 = vsel %vm584_vm2, %v2690_v18, 0.0 }
 0x624   : > { %1233 = vadd.xlane.f32.xlu0 %v1232_v19 }
 0x68f   : > { %v1231_v22 = vpop.xlane.xlu2 %1230 }
 0x690   : > { %v1235_v23 = vmul.f32 %v1231_v22, %v2560_v21 }
 0x692   : > { %v1237_v24 = vsub.f32 %v2685_v14, %v1235_v23 }
 0x694   : > { %v1239_v20 = vmul.f32 %v1237_v24, %v1237_v24 }
 0x696   : > { %v1241_v25 = vsel %vm584_vm2, %v1239_v20, 0.0  ;;  %v1895_v20 = vld [vmem:[%s2855_s10 + $0x18] sm:$0xff] }
 0x697   : > { %v1234_v27 = vpop.xlane.xlu0 %1233  ;;  %1242 = vadd.xlane.f32.xlu1 %v1241_v25  ;;  %1474 = vmatpush.bf16.msrb.mxu2 %v1895_v20 }
 0x698   : > { %v1236_v28 = vmul.f32 %v1234_v27, %v2560_v21 }
 0x69a   : > { %v1238_v29 = vsub.f32 %v2690_v18, %v1236_v28 }
 0x69b   : > { %1475 = vmatpush.bf16.msrb.mxu2 %v1894_v32 }
 0x69c   : > { %v1240_v26 = vmul.f32 %v1238_v29, %v1238_v29 }
 0x69e   : > { %v1244_v30 = vsel %vm584_vm2, %v1240_v26, 0.0 }
 0x69f   : > { %1245 = vadd.xlane.f32.xlu2 %v1244_v30 }
 0x70a   : > { %v1243_v31 = vpop.xlane.xlu1 %1242 }
 0x70b   : > { %v1247_v33 = vmul.f32 %v1243_v31, %v2560_v21 }
 0x70d   : > { %v1249_v35 = vadd.f32 1e-05, %v1247_v33 }
 0x70f   : > { %2073 = vrsqrt.f32 %v1249_v35  ;;  %vm1257_vm7 = vweird.f32 %v1249_v35 }
 0x712   : > { %v1246_v37 = vpop.xlane.xlu2 %1245 }
 0x713   : > { %v1248_v34 = vmul.f32 %v1246_v37, %v2560_v21 }
 0x715   : > { %v2074_v38 = vpop.eup %2073  ;;  %v1250_v39 = vadd.f32 1e-05, %v1248_v34 }
 0x716   : > { %v1252_v40 = vmul.f32 %v2074_v38, %v1249_v35  ;;  %vm1258_vm6 = vweird.f32 %v2074_v38 }
 0x717   : > { %2075 = vrsqrt.f32 %v1250_v39  ;;  %vm1259_vm8 = vmor %vm1257_vm7, %vm1258_vm6  ;;  %vm1267_vm10 = vweird.f32 %v1250_v39 }
 0x718   : > { %v1253_v41 = vmul.f32 %v2074_v38, %v1252_v40  ;;  %v1893_v40 = vld [vmem:[%s2855_s10 + $0x8] sm:$0xff] }
 0x719   : > { %1476 = vmatpush.bf16.msrb.mxu2 %v1893_v40 }
 0x71a   : > { %v1254_v42 = vmul.f32 0.5, %v1253_v41 }
 0x71c   : > { %v1255_v43 = vsub.f32 1.5, %v1254_v42 }
 0x71d   : > { %v2076_v44 = vpop.eup %2075 }
 0x71e   : > { %v1256_v45 = vmul.f32 %v2074_v38, %v1255_v43  ;;  %v1262_v46 = vmul.f32 %v2076_v44, %v1250_v39  ;;  %vm1268_vm9 = vweird.f32 %v2076_v44 }
 0x71f   : > { %vm1269_vm11 = vmor %vm1267_vm10, %vm1268_vm9 }
 0x720   : > { %v1263_v47 = vmul.f32 %v2076_v44, %v1262_v46  ;;  %v1260_v48 = vsel %vm1259_vm8, %v2074_v38, %v1256_v45  ;;  %v1892_v46 = vld [vmem:[%s2855_s10] sm:$0xff] }
 0x721   : > { %v1271_v52 = vmul.f32 %v1260_v48, %v1237_v24  ;;  %1477 = vmatpush.bf16.msrb.mxu2 %v1892_v46 }
 0x722   : > { %v1264_v49 = vmul.f32 0.5, %v1263_v47 }
 0x723   : > { %v1274_v57 = vmul.f32 %v2026_v51, %v1271_v52 }
 0x724   : > { %v1265_v50 = vsub.f32 1.5, %v1264_v49 }
 0x725   : > { %v1277_v55 = vadd.f32 %v2027_v56, %v1274_v57 }
 0x726   : > { %v1266_v53 = vmul.f32 %v2076_v44, %v1265_v50 }
 0x728   : > { %v1270_v54 = vsel %vm1269_vm11, %v2076_v44, %v1266_v53 }
 0x729   : > { %v1272_v58 = vmul.f32 %v1270_v54, %v1238_v29 }
 0x72b   : > { %v1275_v59 = vmul.f32 %v2026_v51, %v1272_v58 }
 0x72d   : > { %v1278_v60 = vadd.f32 %v2027_v56, %v1275_v59 }
 0x72f   : > { %v1279_v61 = vpack.c.bf16 %v1278_v60, %v1277_v55 }
 0x731   : > { %1828 = vmatmul.msk.bf16.vlgmr.msrb.gmra.mxu1 %vm584_vm2, %v1279_v61 }
 0x7ae   : > { %v1312_v63 = vpop.f32.mrf.mxu1 }
 0x7af   : > { %v2712_v0 = vadd.f32 %v2028_v62, %v1312_v63 }
 0x7b1   : > { %v2718_v2 = vmul.f32 0.70710677, %v2712_v0 }
 0x7b3   : > { %v1321_v3 = vmul.f32 %v2718_v2, %v2718_v2 }
 0x7b5   : > { %v1322_v5 = vmin.f32 %v1321_v3, 16.0 }
 0x7b6   : > { %v1314_v6 = vpop.f32.mrf.mxu1 }
 0x7b7   : > { %v1323_v7 = vmul.f32 2.1237322e-06, %v1322_v5  ;;  %v1334_v8 = vmul.f32 3.8918573e-05, %v1322_v5  ;;  %v2725_v9 = vadd.f32 %v2028_v62, %v1314_v6 }
 0x7b9   : > { %v1324_v11 = vadd.f32 0.00028619796, %v1323_v7  ;;  %v1335_v12 = vadd.f32 0.001143296, %v1334_v8  ;;  %v2731_v13 = vmul.f32 0.70710677, %v2725_v9 }
 0x7bb   : > { %v1336_v15 = vmul.f32 %v1335_v12, %v1322_v5  ;;  %v1361_v17 = vmul.f32 %v2731_v13, %v2731_v13  ;;  %v1325_v19 = vmul.f32 %v1324_v11, %v1322_v5 }
 0x7bd   : > { %v1337_v22 = vadd.f32 0.014752088, %v1336_v15  ;;  %v1362_v23 = vmin.f32 %v1361_v17, 16.0  ;;  %v1326_v28 = vadd.f32 0.0036580483, %v1325_v19 }
 0x7bf   : > { %v1338_v24 = vmul.f32 %v1337_v22, %v1322_v5  ;;  %v1363_v25 = vmul.f32 2.1237322e-06, %v1362_v23  ;;  %v1374_v27 = vmul.f32 3.8918573e-05, %v1362_v23  ;;  %v1327_v36 = vmul.f32 %v1326_v28, %v1322_v5 }
 0x7c1   : > { %v1339_v29 = vadd.f32 0.112945676, %v1338_v24  ;;  %v1364_v26 = vadd.f32 0.00028619796, %v1363_v25  ;;  %v1375_v30 = vadd.f32 0.001143296, %v1374_v27 }
 0x7c2   : > { %v1328_v42 = vadd.f32 0.05243302, %v1327_v36  ;;  %v2029_v36 = vld [vmem:[%s2819_s2 + $0xd] ss:$0 sm:$0xff] }
 0x7c3   : > { %v1340_v31 = vmul.f32 %v1339_v29, %v1322_v5  ;;  %v1365_v33 = vmul.f32 %v1364_v26, %v1362_v23  ;;  %v1376_v35 = vmul.f32 %v1375_v30, %v1362_v23  ;;  %v1317_v26 = vmul.f32 0.5, %v2712_v0 }
 0x7c4   : > { %v1329_v48 = vmul.f32 %v1328_v42, %v1322_v5  ;;  %v1318_v30 = vmul.f32 0.5, %v2725_v9 }
 0x7c5   : > { %v1341_v37 = vadd.f32 0.4994258, %v1340_v31  ;;  %v1366_v34 = vadd.f32 0.0036580483, %v1365_v33  ;;  %v1377_v38 = vadd.f32 0.014752088, %v1376_v35 }
 0x7c6   : > { %v1330_v53 = vadd.f32 0.18741608, %v1329_v48 }
 0x7c7   : > { %v1342_v39 = vmul.f32 %v1341_v37, %v1322_v5  ;;  %v1378_v41 = vmul.f32 %v1377_v38, %v1362_v23  ;;  %v1367_v44 = vmul.f32 %v1366_v34, %v1362_v23 }
 0x7c8   : > { %v1331_v59 = vmul.f32 %v1330_v53, %v1322_v5  ;;  %v1900_v53 = vld [vmem:[#allocation13] sm:$0xff] }
 0x7c9   : > { %v1343_v43 = vadd.f32 1.0, %v1342_v39  ;;  %v1379_v45 = vadd.f32 0.112945676, %v1378_v41  ;;  %v1368_v49 = vadd.f32 0.05243302, %v1367_v44 }
 0x7ca   : > { %v1332_v1 = vadd.f32 1.1283791, %v1331_v59 }
 0x7cb   : > { %2077 = vrcp.f32 %v1343_v43  ;;  %v1380_v47 = vmul.f32 %v1379_v45, %v1362_v23  ;;  %v1369_v56 = vmul.f32 %v1368_v49, %v1362_v23  ;;  %v1355_v60 = vand.u32 2147483648, %v1343_v43 }
 0x7cc   : > { %v1353_v62 = vand.u32 2147483647, %v1343_v43  ;;  %vm1349_vm13 = vweird.f32 %v1343_v43  ;;  %v1333_v11 = vmul.f32 %v1332_v1, %v2718_v2 }
 0x7cd   : > { %v1381_v50 = vadd.f32 0.4994258, %v1380_v47  ;;  %v1370_v61 = vadd.f32 0.18741608, %v1369_v56  ;;  %v1356_v6 = vor.u32 1.1754944e-38, %v1355_v60 }
 0x7ce   : > { %vm1354_vm15 = vcmp.eq.f32.partialorder %v1353_v62, 8.507059e+37 }
 0x7cf   : > { %v1382_v51 = vmul.f32 %v1381_v50, %v1362_v23  ;;  %v1371_v7 = vmul.f32 %v1370_v61, %v1362_v23 }
 0x7d1   : > { %v2078_v52 = vpop.eup %2077  ;;  %v1383_v57 = vadd.f32 1.0, %v1382_v51  ;;  %v1372_v5 = vadd.f32 1.1283791, %v1371_v7 }
 0x7d2   : > { %v1345_v54 = vmul.f32 %v2078_v52, %v1343_v43  ;;  %vm1350_vm12 = vweird.f32 %v2078_v52 }
 0x7d3   : > { %2079 = vrcp.f32 %v1383_v57  ;;  %vm1351_vm14 = vmor %vm1349_vm13, %vm1350_vm12  ;;  %v1395_v15 = vand.u32 2147483648, %v1383_v57  ;;  %v1393_v19 = vand.u32 2147483647, %v1383_v57  ;;  %vm1389_vm1 = vweird.f32 %v1383_v57 }
 0x7d4   : > { %v1346_v58 = vsub.f32 1.0, %v1345_v54  ;;  %v1373_v25 = vmul.f32 %v1372_v5, %v2731_v13 }
 0x7d5   : > { %v1396_v24 = vor.u32 1.1754944e-38, %v1395_v15  ;;  %vm1394_vm4 = vcmp.eq.f32.partialorder %v1393_v19, 8.507059e+37 }
 0x7d6   : > { %v1347_v55 = vmul.f32 %v2078_v52, %v1346_v58 }
 0x7d8   : > { %v1348_v63 = vadd.f32 %v2078_v52, %v1347_v55 }
 0x7d9   : > { %v2080_v3 = vpop.eup %2079 }
 0x7da   : > { %v1352_v4 = vsel %vm1351_vm14, %v2078_v52, %v1348_v63  ;;  %v1385_v8 = vmul.f32 %v2080_v3, %v1383_v57  ;;  %vm1390_vm0 = vweird.f32 %v2080_v3 }
 0x7db   : > { %v1357_v10 = vsel %vm1354_vm15, %v1356_v6, %v1352_v4  ;;  %vm1391_vm3 = vmor %vm1389_vm1, %vm1390_vm0 }
 0x7dc   : > { %v1386_v12 = vsub.f32 1.0, %v1385_v8  ;;  %v1358_v16 = vmul.f32 %v1357_v10, %v1333_v11 }
 0x7de   : > { %v1387_v17 = vmul.f32 %v2080_v3, %v1386_v12  ;;  %v1829_v20 = vclamps-f32 %v1358_v16, 1.0  ;;  %v2031_v12 = vld [vmem:[%s2819_s2 + $0x7] ss:$0 sm:$0xff] }
 0x7e0   : > { %v1388_v22 = vadd.f32 %v2080_v3, %v1387_v17  ;;  %v1401_v29 = vadd.f32 1.0, %v1829_v20 }
 0x7e2   : > { %v1392_v23 = vsel %vm1391_vm3, %v2080_v3, %v1388_v22  ;;  %v1403_v32 = vmul.f32 %v1401_v29, %v1317_v26 }
 0x7e3   : > { %v1397_v27 = vsel %vm1394_vm4, %v1396_v24, %v1392_v23  ;;  %v2032_v24 = vld [vmem:[%s2856_s12] ss:$0 sm:$0xff]  ;;  %s2255_s12 = scalar_lea.hbm %s2857_s8, 32 }
 0x7e4   : > { %v1398_v28 = vmul.f32 %v1397_v27, %v1373_v25  ;;  %p2257_p12 = scmp.lt.s32.totalorder %s2255_s12, %s2251_s21 }
 0x7e6   : > { %v1830_v2 = vclamps-f32 %v1398_v28, 1.0  ;;  %p2258_p13 = por %p2257_p12, %p2256_p10 }
 0x7e8   : > { %v1402_v31 = vadd.f32 1.0, %v1830_v2  ;;  %p2259_p2 = pnand %p2258_p13, %p2254_p9 }
 0x7ea   : > { %v1404_v33 = vmul.f32 %v1402_v31, %v1318_v30 }
 0x7ec   : > { %v1405_v35 = vpack.c.bf16 %v1404_v33, %v1403_v32 }
 0x7ee   : > { %1478 = vmatmul.bf16.vlgmr.msrb.gmra.mxu2 %v1405_v35 }
 0x871   : > { %v1479_v13 = vpop.f32.mrf.mxu2 }
 0x872   : > { %v1484_v37 = vadd.f32 %v1479_v13, %v2685_v14 }
 0x874   : > { %v1488_v34 = vadd.f32 %v2029_v36, %v1484_v37 }
 0x876   : > { %v1492_v38 = vsel %vm584_vm2, %v1488_v34, 0.0 }
 0x877   : > { %1493 = vadd.xlane.f32.xlu0 %v1492_v38 }
 0x879   : > { %v1481_v39 = vpop.f32.mrf.mxu2 }
 0x87a   : > { %v1485_v0 = vadd.f32 %v1481_v39, %v2690_v18  ;;  %v1901_v18 = vld [vmem:[#allocation13 + $0x8] sm:$0xff] }
 0x87b   : > { %1572 = vmatpush.bf16.msrb.mxu3 %v1901_v18 }
 0x87c   : > { %v1489_v9 = vadd.f32 %v2029_v36, %v1485_v0 }
 0x87e   : > { %v1495_v40 = vsel %vm584_vm2, %v1489_v9, 0.0 }
 0x87f   : > { %1496 = vadd.xlane.f32.xlu1 %v1495_v40  ;;  %1573 = vmatpush.bf16.msrb.mxu3 %v1900_v53 }
 0x8ea   : > { %v1494_v41 = vpop.xlane.xlu0 %1493 }
 0x8eb   : > { %v1498_v42 = vmul.f32 %v1494_v41, %v2560_v21 }
 0x8ed   : > { %v1500_v43 = vsub.f32 %v1488_v34, %v1498_v42 }
 0x8ef   : > { %v1502_v44 = vmul.f32 %v1500_v43, %v1500_v43 }
 0x8f1   : > { %v1504_v45 = vsel %vm584_vm2, %v1502_v44, 0.0 }
 0x8f2   : > { %1505 = vadd.xlane.f32.xlu2 %v1504_v45  ;;  %v1497_v14 = vpop.xlane.xlu1 %1496 }
 0x8f3   : > { %v1499_v46 = vmul.f32 %v1497_v14, %v2560_v21 }
 0x8f5   : > { %v1501_v47 = vsub.f32 %v1489_v9, %v1499_v46 }
 0x8f7   : > { %v1503_v48 = vmul.f32 %v1501_v47, %v1501_v47 }
 0x8f9   : > { %v1507_v49 = vsel %vm584_vm2, %v1503_v48, 0.0 }
 0x8fa   : > { %1508 = vadd.xlane.f32.xlu0 %v1507_v49 }
 0x965   : > { %v1506_v50 = vpop.xlane.xlu2 %1505 }
 0x966   : > { %v1510_v51 = vmul.f32 %v1506_v50, %v2560_v21 }
 0x968   : > { %v1512_v52 = vadd.f32 1e-05, %v1510_v51 }
 0x96a   : > { %2081 = vrsqrt.f32 %v1512_v52  ;;  %vm1520_vm6 = vweird.f32 %v1512_v52 }
 0x96d   : > { %v1509_v54 = vpop.xlane.xlu0 %1508 }
 0x96e   : > { %v1511_v56 = vmul.f32 %v1509_v54, %v2560_v21  ;;  %v2030_v21 = vld [vmem:[%s2819_s2 + $0x6] ss:$0 sm:$0xff] }
 0x970   : > { %v2082_v57 = vpop.eup %2081  ;;  %v1513_v58 = vadd.f32 1e-05, %v1511_v56 }
 0x971   : > { %v1515_v59 = vmul.f32 %v2082_v57, %v1512_v52  ;;  %vm1521_vm5 = vweird.f32 %v2082_v57 }
 0x972   : > { %2083 = vrsqrt.f32 %v1513_v58  ;;  %vm1522_vm7 = vmor %vm1520_vm6, %vm1521_vm5  ;;  %vm1530_vm9 = vweird.f32 %v1513_v58 }
 0x973   : > { %v1516_v55 = vmul.f32 %v2082_v57, %v1515_v59 }
 0x975   : > { %v1517_v60 = vmul.f32 0.5, %v1516_v55 }
 0x977   : > { %v1518_v61 = vsub.f32 1.5, %v1517_v60 }
 0x978   : > { %v2084_v62 = vpop.eup %2083 }
 0x979   : > { %v1519_v63 = vmul.f32 %v2082_v57, %v1518_v61  ;;  %v1525_v1 = vmul.f32 %v2084_v62, %v1513_v58  ;;  %vm1531_vm8 = vweird.f32 %v2084_v62 }
 0x97a   : > { %vm1532_vm10 = vmor %vm1530_vm9, %vm1531_vm8 }
 0x97b   : > { %v1526_v3 = vmul.f32 %v2084_v62, %v1525_v1  ;;  %v1523_v4 = vsel %vm1522_vm7, %v2082_v57, %v1519_v63 }
 0x97c   : > { %v1534_v8 = vmul.f32 %v1523_v4, %v1500_v43 }
 0x97d   : > { %v1527_v6 = vmul.f32 0.5, %v1526_v3 }
 0x97e   : > { %v1537_v5 = vmul.f32 %v2030_v21, %v1534_v8 }
 0x97f   : > { %v1528_v7 = vsub.f32 1.5, %v1527_v6 }
 0x980   : > { %v1540_v17 = vadd.f32 %v2031_v12, %v1537_v5 }
 0x981   : > { %v1529_v10 = vmul.f32 %v2084_v62, %v1528_v7 }
 0x983   : > { %v1533_v11 = vsel %vm1532_vm10, %v2084_v62, %v1529_v10 }
 0x984   : > { %v1535_v15 = vmul.f32 %v1533_v11, %v1501_v47 }
 0x986   : > { %v1538_v16 = vmul.f32 %v2030_v21, %v1535_v15 }
 0x988   : > { %v1541_v19 = vadd.f32 %v2031_v12, %v1538_v16 }
 0x98a   : > { %v1542_v22 = vpack.c.bf16 %v1541_v19, %v1540_v17 }
 0x98c   : > { %1871 = vmatmul.msk.bf16.vlgmr.msrb.gmra.mxu3 %vm584_vm2, %v1542_v22 }
 0xa0f   : > { %v1575_v20 = vpop.f32.mrf.mxu3 }
 0xa10   : > { %v1576_v25 = vadd.f32 %v2032_v24, %v1575_v20 }
 0xa12   : > { %1580 = vst [vmem:[%s563_s13] sm:$0xff] %v1576_v25 }
 0xa17   : > { %v1577_v23 = vpop.f32.mrf.mxu3 }
 0xa18   : > { %v1578_v27 = vadd.f32 %v2032_v24, %v1577_v23 }
 0xa1a   : > { %1581 = vst [vmem:[%s563_s13 + $0x8] sm:$0xff] %v1578_v27 }
 0xa1b   : > { %2262 = shalt.err (!%p2259_p2)
}
 0xa1c   : > { %s2341_s23 = smov 128   ;;  %s2858_s13 = smov 8  }
 0xa1d   : > { %1921 = dma.vmem_to_hbm [thread:$0]  (%p2504_p0), %s1598_s19, 256, %s1600_s6, %s1583_s24, %s2341_s23, %s2341_s23, %s2858_s13  }
 0xa1e PF: > { %s1614_s7 = sand.u32 1, %s2305_s25   ;;  %p1941_p4 = pnand %p1747_p6, %p2511_p5 }
 0xa1f   : > { %s1615_s11 = scalar_lea.sflag [#allocation7], %s1614_s7 }
 0xa20   : > { %p1942_p7 = pneg %p1941_p4 }
 0xa22   : > { %2300 = dma.done.wait (%p1942_p7), %s1615_s11, 256  }
 0xa23   : > { %2302 = vsyncadd (%p1942_p7), %s1615_s11, 4294967040  ;;  %s31_s30 = sadd.s32 1, %s2325_s30   ;;  %s2859_s22 = sld [smem:[#allocation19_spill]] }
 0xa24   : > { %p28_p11 = scmp.ge.s32.totalorder %s31_s30, 4   ;;  %s2860_s25 = smov %s2309_s26 }
 0xa25   : > { %s2861_s26 = smov %s2313_s27  ;;  %s2862_s27 = smov %s2509_s17 }
 0xa26   : > { %s2863_s28 = smov %s2321_s29  ;;  %30 = sbr.rel (!%p28_p11) target bundleno = 16 (0x10), region = 140 }
 0xa29   : > { %s2864_s29 = smov %s2859_s22 }
 0xa2b   :  { %1621 = vsyncpa [#allocation6], 1 }
 0xa2c   :  { %1623 = vsyncpa [#allocation6 + $0x1], 1 }
 0xa2d   :  { %1624 = vsyncpa [#allocation9], 1 }
 0xa2e   :  { %1625 = vsyncpa [#allocation12], 1 }
 0xa2f   :  { %1626 = vsyncpa [#allocation7], 1 }
 0xa30   :  { %1628 = vsyncpa [#allocation7 + $0x1], 1 }

</bundles_post_ra>
